<compile_context>
chip_gen: v6e
topology: v6e:2x2x1
jax: 0.10.0
libtpu: 0.0.40
codegen_flags: <defaults>
</compile_context>

<pallas_src>
import math
import functools

import numpy as np
import jax
import jax.numpy as jnp
from jax.experimental import pallas as pl
from jax.experimental.pallas import tpu as pltpu


# ----------------------------------------------------------------------------
# Host-side setup (not the hot path): rotation sampling matrices.
# ----------------------------------------------------------------------------
def _rotation_sampling_matrix(angle_deg, H, W):
    """M[p, q]: bilinear weight of input pixel q for rotated output pixel p.

    Matches F.affine_grid + F.grid_sample with align_corners=True,
    mode='bilinear', padding_mode='zeros', theta=[[cos,-sin,0],[sin,cos,0]].
    """
    rad = angle_deg * math.pi / 180.0
    c, s = math.cos(rad), math.sin(rad)
    ii, jj = np.meshgrid(np.arange(H), np.arange(W), indexing="ij")
    xb = -1.0 + 2.0 * jj / (W - 1)            # normalized x (width) coord
    yb = -1.0 + 2.0 * ii / (H - 1)            # normalized y (height) coord
    xs = c * xb - s * yb                      # source normalized coords
    ys = s * xb + c * yb
    ix = (xs + 1.0) * (W - 1) / 2.0           # source pixel coords
    iy = (ys + 1.0) * (H - 1) / 2.0
    x0 = np.floor(ix).astype(np.int64); x1 = x0 + 1
    y0 = np.floor(iy).astype(np.int64); y1 = y0 + 1
    wx1 = ix - x0; wx0 = 1.0 - wx1
    wy1 = iy - y0; wy0 = 1.0 - wy1
    p = (ii * W + jj).ravel()
    M = np.zeros((H * W, H * W), dtype=np.float64)
    for yc, xc, wy, wx in ((y0, x0, wy0, wx0), (y0, x1, wy0, wx1),
                           (y1, x0, wy1, wx0), (y1, x1, wy1, wx1)):
        valid = (xc >= 0) & (xc < W) & (yc >= 0) & (yc < H)
        q = (np.clip(yc, 0, H - 1) * W + np.clip(xc, 0, W - 1)).ravel()
        w = (wy * wx * valid).ravel()
        np.add.at(M, (p, q), w)
    return M.astype(np.float32)


def build_rotation_matrices(group, H, W):
    """Mt[g, q, p] = M_g[p, q]  so that rot_g = x_flat @ Mt[g]."""
    return jnp.asarray(
        np.stack([_rotation_sampling_matrix(a, H, W).T for a in group]),
        dtype=jnp.float32)                                    # (G, HW, HW)


def pack_rotation_lanes(rot_mats):
    """(G, HW, HW) -> (HW, G*HW): per-group blocks concatenated along the lane axis."""
    G, HW, _ = rot_mats.shape
    return jnp.transpose(rot_mats, (1, 0, 2)).reshape(HW, G * HW)


# ----------------------------------------------------------------------------
# Pallas kernel.  grid = (steps,), each step handles gps = G/steps group elements:
#   one bf16 rotation matmul (lanes = gps*HW), K*K lane-rolls + in-kernel masks,
#   one bf16 weight matmul, direct store in the final (B, G, C_out, HW) layout.
# ----------------------------------------------------------------------------
def _group_conv_kernel(x_ref, m_ref, w_ref, b_ref, o_ref, stacked_ref, *,
                       taps, H, W, hw, gps, b_cin, batch, c_out):
    lanes = gps * hw

    # Stage 1: rotations for all groups of this step — single bf16 MXU matmul,
    # batch*channels folded into rows, groups folded into lanes, f32 accumulation.
    rot = jnp.dot(x_ref[...], m_ref[...],
                  preferred_element_type=jnp.float32)          # (B*C_in, gps*HW) f32

    # Per-lane (row, col) within each HW image block, computed in-kernel from a lane
    # iota (no streamed mask input).  Float math with a small epsilon; exact for any
    # realistic H, W (values << 2^24).
    li = jax.lax.broadcasted_iota(jnp.int32, (1, lanes), 1).astype(jnp.float32)
    eps = 1e-3
    rg = jnp.floor(li / W + eps)               # global row index in [0, gps*H)
    col = li - rg * W                          # column within image, [0, W)
    row = rg - H * jnp.floor(rg / H + eps)     # row within image,    [0, H)

    # Stage 2: conv taps = static lane rolls + zero-padding masks (XLU/VPU only, f32),
    # staged into a VMEM scratch at static, sublane-tile-aligned offsets.
    for k, (dy, dx) in enumerate(taps):
        if dy == 0 and dx == 0:                # center tap: identity, fully valid
            tap = rot
        else:
            off = dy * W + dx
            shifted = pltpu.roll(rot, (-off) % lanes, axis=1)  # shifted[p] = rot[p+off]
            valid = ((col >= float(-dx)) & (col <= float(W - 1 - dx)) &
                     (row >= float(-dy)) & (row <= float(H - 1 - dy)))
            tap = jnp.where(valid, shifted, 0.0)
        stacked_ref[k * b_cin:(k + 1) * b_cin, :] = tap

    # Stage 3: one weight contraction folding batch + all taps (bf16 MXU inputs,
    # f32 accumulation), plus bias broadcast.
    res = (jnp.dot(w_ref[...], stacked_ref[...].astype(jnp.bfloat16),
                   preferred_element_type=jnp.float32)
           + b_ref[...])                                       # (B*C_out, gps*HW) f32

    # Store directly in the final layout (B, g, C_out, HW): static, lane-aligned group
    # slice + sublane-tile-preserving reshape -> lane-dense stores, no XLA transpose.
    for gl in range(gps):
        blk = res[:, gl * hw:(gl + 1) * hw].reshape(batch, c_out, hw)
        o_ref[:, gl, :, :] = blk


def group_conv_forward(x, conv_w, conv_b, rot_lanes):
    B, C_in, H, W = x.shape
    HW = H * W
    G = rot_lanes.shape[1] // HW
    C_out, _, K, _ = conv_w.shape
    KK = K * K
    pad = K // 2

    # Preconditions for the roll+mask tap trick (stride-1 SAME conv).
    assert H > 1 and W > 1, "degenerate spatial size"
    assert pad * (W + 1) < HW, "kernel too large for the lane-roll tap trick"

    # Fold groups into the lane axis.  Two grid steps when G is even so both v7x
    # TensorCores get work; otherwise a single step (minimal per-step overhead).
    steps = 2 if (G % 2 == 0 and G >= 2) else 1
    gps = G // steps
    lanes = gps * HW

    taps = tuple((ky - pad, kx - pad) for ky in range(K) for kx in range(K))

    # bf16 streamed operands (MXU-native), f32 accumulation inside the kernel.
    x_flat = x.reshape(B * C_in, HW).astype(jnp.bfloat16)
    m_lanes = rot_lanes.astype(jnp.bfloat16)                    # (HW, G*HW)

    # (B*C_out, KK*B*C_in) weight, block-diagonal over batch so batch + taps fold into
    # a single MXU contraction inside the kernel.
    # TODO(synk): for large B drop this O(B^2) eye-fold (wasted zero FLOPs / VMEM) and
    # keep the contraction at KK*C_in with batch looped or in lanes; fine at B=2.
    w_taps = jnp.transpose(conv_w.reshape(C_out, C_in, KK), (2, 0, 1))   # (KK,C_out,C_in)
    eye_b = jnp.eye(B, dtype=jnp.float32)
    big_w = jnp.einsum("koc,ab->aokbc", w_taps.astype(jnp.float32), eye_b)
    big_w = big_w.reshape(B * C_out, KK * B * C_in).astype(jnp.bfloat16)

    big_bias = jnp.tile(conv_b.astype(jnp.float32), B).reshape(B * C_out, 1)

    flops = steps * (2 * (B * C_in) * HW * lanes
                     + 2 * (B * C_out) * (KK * B * C_in) * lanes)
    bytes_accessed = int(2 * (x_flat.size + m_lanes.size + big_w.size)
                         + 4 * (big_bias.size + B * G * C_out * HW))

    # TODO(synk): scalability guard — if HW grows (HW^2 * 2 B double-buffered near the
    # scoped-VMEM limit), tile the q (contraction) axis of the rotation matrices with an
    # extra "arbitrary" grid axis + f32 VMEM accumulator and set vmem_limit_bytes.
    kernel = functools.partial(_group_conv_kernel, taps=taps, H=H, W=W, hw=HW,
                               gps=gps, b_cin=B * C_in, batch=B, c_out=C_out)

    out = pl.pallas_call(
        kernel,
        out_shape=jax.ShapeDtypeStruct((B, G, C_out, HW), jnp.float32),
        grid_spec=pltpu.PrefetchScalarGridSpec(
            num_scalar_prefetch=0,
            grid=(steps,),
            in_specs=[
                pl.BlockSpec((B * C_in, HW), lambda s: (0, 0)),          # x (invariant)
                pl.BlockSpec((HW, lanes), lambda s: (0, s)),             # rotation lanes
                pl.BlockSpec((B * C_out, KK * B * C_in), lambda s: (0, 0)),
                pl.BlockSpec((B * C_out, 1), lambda s: (0, 0)),
            ],
            out_specs=pl.BlockSpec((B, gps, C_out, HW), lambda s: (0, s, 0, 0)),
            scratch_shapes=[pltpu.VMEM((KK * B * C_in, lanes), jnp.float32)],
        ),
        compiler_params=pltpu.CompilerParams(
            dimension_semantics=("parallel",)),                 # steps across v7x's 2 TCs
        cost_estimate=pl.CostEstimate(flops=int(flops), transcendentals=0,
                                      bytes_accessed=bytes_accessed),
    )(x_flat, m_lanes, big_w, big_bias)

    # (B, G, C_out, HW) is already batch-major with group-major channels (== torch.cat
    # along dim=1): only a free reshape remains, no transpose kernel.
    return out.reshape(B, G * C_out, H, W)


if __name__ == "__main__":
    B, C_in, C_out, H, W, K = 2, 4, 8, 16, 16, 3
    group = [0.0, 30.0, 90.0, 180.0]          # degrees, as in the PyTorch module
    G = len(group)

    key = jax.random.PRNGKey(0)
    kx, kw, kb = jax.random.split(key, 3)
    x = jax.random.normal(kx, (B, C_in, H, W), dtype=jnp.float32)
    # deterministic Conv2d-style init: uniform(-1/sqrt(fan_in), 1/sqrt(fan_in))
    bound = 1.0 / math.sqrt(C_in * K * K)
    conv_w = jax.random.uniform(kw, (C_out, C_in, K, K), jnp.float32, -bound, bound)
    conv_b = jax.random.uniform(kb, (C_out,), jnp.float32, -bound, bound)

    # TODO(synk): learnable_rotations=True would just recompute rot_mats from the angle
    # parameters on the host before each call; the same kernel applies unchanged.
    rot_mats = build_rotation_matrices(group, H, W)     # (G, HW, HW)
    rot_lanes = pack_rotation_lanes(rot_mats)           # (HW, G*HW)

    fwd = jax.jit(group_conv_forward)
    out = fwd(x, conv_w, conv_b, rot_lanes)
    out = jax.block_until_ready(out)
    assert out.shape == (B, G * C_out, H, W), out.shape

    # pure-JAX reference: rotate with the sampling matrices, then lax conv (SAME pad)
    rot = jnp.einsum("bcq,gqp->gbcp", x.reshape(B, C_in, H * W), rot_mats,
                     precision=jax.lax.Precision.HIGHEST).reshape(G, B, C_in, H, W)
    ref = jax.vmap(lambda r: jax.lax.conv_general_dilated(
        r, conv_w, (1, 1), "SAME",
        dimension_numbers=("NCHW", "OIHW", "NCHW"),
        precision=jax.lax.Precision.HIGHEST))(rot)
    ref = ref + conv_b[None, None, :, None, None]
    ref = jnp.transpose(ref, (1, 0, 2, 3, 4)).reshape(B, G * C_out, H, W)

    max_err = float(jnp.max(jnp.abs(out - ref)))
    assert jnp.allclose(out, ref, atol=5e-2, rtol=5e-2), max_err

    print("KERNEL_OK")
</pallas_src>

<mosaic_0001>
module attributes {stable_mosaic.version = 11 : i64} {
  func.func @_group_conv_kernel(%arg0: i32, %arg1: memref<8x256xbf16, #tpu.memory_space<vmem>>, %arg2: memref<256x512xbf16, #tpu.memory_space<vmem>>, %arg3: memref<16x72xbf16, #tpu.memory_space<vmem>>, %arg4: memref<16x1xf32, #tpu.memory_space<vmem>>, %arg5: memref<2x2x8x256xf32, #tpu.memory_space<vmem>>, %arg6: memref<72x512xf32, #tpu.memory_space<vmem>>) attributes {dimension_semantics = [#tpu.dimension_semantics<parallel>], iteration_bounds = array<i64: 2>, scalar_prefetch = 0 : i64, scratch_operands = 1 : i64, tpu.core_type = #tpu.core_type<tc>, window_params = [{pipeline_mode = #tpu.pipeline_mode<synchronous>, transform_indices = @transform_0, window_bounds = array<i64: 8, 256>}, {transform_indices = @transform_1, window_bounds = array<i64: 256, 512>}, {pipeline_mode = #tpu.pipeline_mode<synchronous>, transform_indices = @transform_2, window_bounds = array<i64: 16, 72>}, {pipeline_mode = #tpu.pipeline_mode<synchronous>, transform_indices = @transform_3, window_bounds = array<i64: 16, 1>}, {transform_indices = @transform_4, window_bounds = array<i64: 2, 2, 8, 256>}]} {
    %c0 = arith.constant 0 : index
    %c0_0 = arith.constant 0 : index
    %0 = vector.load %arg1[%c0, %c0_0] : memref<8x256xbf16, #tpu.memory_space<vmem>>, vector<8x256xbf16>
    %c0_1 = arith.constant 0 : index
    %c0_2 = arith.constant 0 : index
    %1 = vector.load %arg2[%c0_1, %c0_2] : memref<256x512xbf16, #tpu.memory_space<vmem>>, vector<256x512xbf16>
    %cst = arith.constant dense<0.000000e+00> : vector<8x512xf32>
    %2 = tpu.matmul %0, %1, %cst {dimension_numbers = #tpu.dot_dimension_numbers<[1], [0], [0], [1], [0, 0, 1, 1], [], []>} : vector<8x256xbf16>, vector<256x512xbf16>, vector<8x512xf32> -> vector<8x512xf32>
    %3 = tpu.iota {dimensions = array<i32: 1>} : vector<1x512xi32>
    %4 = arith.sitofp %3 : vector<1x512xi32> to vector<1x512xf32>
    %cst_3 = arith.constant 1.600000e+01 : f32
    %5 = vector.broadcast %cst_3 : f32 to vector<1x512xf32>
    %6 = arith.divf %4, %5 : vector<1x512xf32>
    %cst_4 = arith.constant 1.000000e-03 : f32
    %7 = vector.broadcast %cst_4 : f32 to vector<1x512xf32>
    %8 = arith.addf %6, %7 : vector<1x512xf32>
    %9 = math.floor %8 : vector<1x512xf32>
    %cst_5 = arith.constant 1.600000e+01 : f32
    %10 = vector.broadcast %cst_5 : f32 to vector<1x512xf32>
    %11 = arith.mulf %9, %10 : vector<1x512xf32>
    %12 = arith.subf %4, %11 : vector<1x512xf32>
    %cst_6 = arith.constant 1.600000e+01 : f32
    %13 = vector.broadcast %cst_6 : f32 to vector<1x512xf32>
    %14 = arith.divf %9, %13 : vector<1x512xf32>
    %cst_7 = arith.constant 1.000000e-03 : f32
    %15 = vector.broadcast %cst_7 : f32 to vector<1x512xf32>
    %16 = arith.addf %14, %15 : vector<1x512xf32>
    %17 = math.floor %16 : vector<1x512xf32>
    %cst_8 = arith.constant 1.600000e+01 : f32
    %18 = vector.broadcast %cst_8 : f32 to vector<1x512xf32>
    %19 = arith.mulf %18, %17 : vector<1x512xf32>
    %20 = arith.subf %9, %19 : vector<1x512xf32>
    %c17_i32 = arith.constant 17 : i32
    %21 = tpu.dynamic_rotate %2 by %c17_i32 dim 1 : vector<8x512xf32>, i32 -> vector<8x512xf32>
    %cst_9 = arith.constant 1.000000e+00 : f32
    %22 = vector.broadcast %cst_9 : f32 to vector<1x512xf32>
    %23 = arith.cmpf oge, %12, %22 : vector<1x512xf32>
    %cst_10 = arith.constant 1.600000e+01 : f32
    %24 = vector.broadcast %cst_10 : f32 to vector<1x512xf32>
    %25 = arith.cmpf ole, %12, %24 : vector<1x512xf32>
    %26 = arith.andi %23, %25 : vector<1x512xi1>
    %cst_11 = arith.constant 1.000000e+00 : f32
    %27 = vector.broadcast %cst_11 : f32 to vector<1x512xf32>
    %28 = arith.cmpf oge, %20, %27 : vector<1x512xf32>
    %29 = arith.andi %26, %28 : vector<1x512xi1>
    %cst_12 = arith.constant 1.600000e+01 : f32
    %30 = vector.broadcast %cst_12 : f32 to vector<1x512xf32>
    %31 = arith.cmpf ole, %20, %30 : vector<1x512xf32>
    %32 = arith.andi %29, %31 : vector<1x512xi1>
    %cst_13 = arith.constant 0.000000e+00 : f32
    %33 = vector.shape_cast %32 : vector<1x512xi1> to vector<1x512xi1>
    %34 = vector.broadcast %33 : vector<1x512xi1> to vector<8x512xi1>
    %35 = vector.broadcast %cst_13 : f32 to vector<8x512xf32>
    %36 = arith.select %34, %21, %35 : vector<8x512xi1>, vector<8x512xf32>
    %c0_14 = arith.constant 0 : index
    %c0_15 = arith.constant 0 : index
    %37 = vector.load %arg6[%c0_14, %c0_15] : memref<72x512xf32, #tpu.memory_space<vmem>>, vector<8x512xf32>
    tpu.vector_store %arg6[%c0_14, %c0_15], %36 {strides = array<i32>} : memref<72x512xf32, #tpu.memory_space<vmem>>, vector<8x512xf32>,
    %c16_i32 = arith.constant 16 : i32
    %38 = tpu.dynamic_rotate %2 by %c16_i32 dim 1 : vector<8x512xf32>, i32 -> vector<8x512xf32>
    %cst_16 = arith.constant 0.000000e+00 : f32
    %39 = vector.broadcast %cst_16 : f32 to vector<1x512xf32>
    %40 = arith.cmpf oge, %12, %39 : vector<1x512xf32>
    %cst_17 = arith.constant 1.500000e+01 : f32
    %41 = vector.broadcast %cst_17 : f32 to vector<1x512xf32>
    %42 = arith.cmpf ole, %12, %41 : vector<1x512xf32>
    %43 = arith.andi %40, %42 : vector<1x512xi1>
    %cst_18 = arith.constant 1.000000e+00 : f32
    %44 = vector.broadcast %cst_18 : f32 to vector<1x512xf32>
    %45 = arith.cmpf oge, %20, %44 : vector<1x512xf32>
    %46 = arith.andi %43, %45 : vector<1x512xi1>
    %cst_19 = arith.constant 1.600000e+01 : f32
    %47 = vector.broadcast %cst_19 : f32 to vector<1x512xf32>
    %48 = arith.cmpf ole, %20, %47 : vector<1x512xf32>
    %49 = arith.andi %46, %48 : vector<1x512xi1>
    %cst_20 = arith.constant 0.000000e+00 : f32
    %50 = vector.shape_cast %49 : vector<1x512xi1> to vector<1x512xi1>
    %51 = vector.broadcast %50 : vector<1x512xi1> to vector<8x512xi1>
    %52 = vector.broadcast %cst_20 : f32 to vector<8x512xf32>
    %53 = arith.select %51, %38, %52 : vector<8x512xi1>, vector<8x512xf32>
    %c8 = arith.constant 8 : index
    %c0_21 = arith.constant 0 : index
    %54 = vector.load %arg6[%c8, %c0_21] : memref<72x512xf32, #tpu.memory_space<vmem>>, vector<8x512xf32>
    tpu.vector_store %arg6[%c8, %c0_21], %53 {strides = array<i32>} : memref<72x512xf32, #tpu.memory_space<vmem>>, vector<8x512xf32>,
    %c15_i32 = arith.constant 15 : i32
    %55 = tpu.dynamic_rotate %2 by %c15_i32 dim 1 : vector<8x512xf32>, i32 -> vector<8x512xf32>
    %cst_22 = arith.constant -1.000000e+00 : f32
    %56 = vector.broadcast %cst_22 : f32 to vector<1x512xf32>
    %57 = arith.cmpf oge, %12, %56 : vector<1x512xf32>
    %cst_23 = arith.constant 1.400000e+01 : f32
    %58 = vector.broadcast %cst_23 : f32 to vector<1x512xf32>
    %59 = arith.cmpf ole, %12, %58 : vector<1x512xf32>
    %60 = arith.andi %57, %59 : vector<1x512xi1>
    %cst_24 = arith.constant 1.000000e+00 : f32
    %61 = vector.broadcast %cst_24 : f32 to vector<1x512xf32>
    %62 = arith.cmpf oge, %20, %61 : vector<1x512xf32>
    %63 = arith.andi %60, %62 : vector<1x512xi1>
    %cst_25 = arith.constant 1.600000e+01 : f32
    %64 = vector.broadcast %cst_25 : f32 to vector<1x512xf32>
    %65 = arith.cmpf ole, %20, %64 : vector<1x512xf32>
    %66 = arith.andi %63, %65 : vector<1x512xi1>
    %cst_26 = arith.constant 0.000000e+00 : f32
    %67 = vector.shape_cast %66 : vector<1x512xi1> to vector<1x512xi1>
    %68 = vector.broadcast %67 : vector<1x512xi1> to vector<8x512xi1>
    %69 = vector.broadcast %cst_26 : f32 to vector<8x512xf32>
    %70 = arith.select %68, %55, %69 : vector<8x512xi1>, vector<8x512xf32>
    %c16 = arith.constant 16 : index
    %c0_27 = arith.constant 0 : index
    %71 = vector.load %arg6[%c16, %c0_27] : memref<72x512xf32, #tpu.memory_space<vmem>>, vector<8x512xf32>
    tpu.vector_store %arg6[%c16, %c0_27], %70 {strides = array<i32>} : memref<72x512xf32, #tpu.memory_space<vmem>>, vector<8x512xf32>,
    %c1_i32 = arith.constant 1 : i32
    %72 = tpu.dynamic_rotate %2 by %c1_i32 dim 1 : vector<8x512xf32>, i32 -> vector<8x512xf32>
    %cst_28 = arith.constant 1.000000e+00 : f32
    %73 = vector.broadcast %cst_28 : f32 to vector<1x512xf32>
    %74 = arith.cmpf oge, %12, %73 : vector<1x512xf32>
    %cst_29 = arith.constant 1.600000e+01 : f32
    %75 = vector.broadcast %cst_29 : f32 to vector<1x512xf32>
    %76 = arith.cmpf ole, %12, %75 : vector<1x512xf32>
    %77 = arith.andi %74, %76 : vector<1x512xi1>
    %cst_30 = arith.constant 0.000000e+00 : f32
    %78 = vector.broadcast %cst_30 : f32 to vector<1x512xf32>
    %79 = arith.cmpf oge, %20, %78 : vector<1x512xf32>
    %80 = arith.andi %77, %79 : vector<1x512xi1>
    %cst_31 = arith.constant 1.500000e+01 : f32
    %81 = vector.broadcast %cst_31 : f32 to vector<1x512xf32>
    %82 = arith.cmpf ole, %20, %81 : vector<1x512xf32>
    %83 = arith.andi %80, %82 : vector<1x512xi1>
    %cst_32 = arith.constant 0.000000e+00 : f32
    %84 = vector.shape_cast %83 : vector<1x512xi1> to vector<1x512xi1>
    %85 = vector.broadcast %84 : vector<1x512xi1> to vector<8x512xi1>
    %86 = vector.broadcast %cst_32 : f32 to vector<8x512xf32>
    %87 = arith.select %85, %72, %86 : vector<8x512xi1>, vector<8x512xf32>
    %c24 = arith.constant 24 : index
    %c0_33 = arith.constant 0 : index
    %88 = vector.load %arg6[%c24, %c0_33] : memref<72x512xf32, #tpu.memory_space<vmem>>, vector<8x512xf32>
    tpu.vector_store %arg6[%c24, %c0_33], %87 {strides = array<i32>} : memref<72x512xf32, #tpu.memory_space<vmem>>, vector<8x512xf32>,
    %c32 = arith.constant 32 : index
    %c0_34 = arith.constant 0 : index
    %89 = vector.load %arg6[%c32, %c0_34] : memref<72x512xf32, #tpu.memory_space<vmem>>, vector<8x512xf32>
    tpu.vector_store %arg6[%c32, %c0_34], %2 {strides = array<i32>} : memref<72x512xf32, #tpu.memory_space<vmem>>, vector<8x512xf32>,
    %c511_i32 = arith.constant 511 : i32
    %90 = tpu.dynamic_rotate %2 by %c511_i32 dim 1 : vector<8x512xf32>, i32 -> vector<8x512xf32>
    %cst_35 = arith.constant -1.000000e+00 : f32
    %91 = vector.broadcast %cst_35 : f32 to vector<1x512xf32>
    %92 = arith.cmpf oge, %12, %91 : vector<1x512xf32>
    %cst_36 = arith.constant 1.400000e+01 : f32
    %93 = vector.broadcast %cst_36 : f32 to vector<1x512xf32>
    %94 = arith.cmpf ole, %12, %93 : vector<1x512xf32>
    %95 = arith.andi %92, %94 : vector<1x512xi1>
    %cst_37 = arith.constant 0.000000e+00 : f32
    %96 = vector.broadcast %cst_37 : f32 to vector<1x512xf32>
    %97 = arith.cmpf oge, %20, %96 : vector<1x512xf32>
    %98 = arith.andi %95, %97 : vector<1x512xi1>
    %cst_38 = arith.constant 1.500000e+01 : f32
    %99 = vector.broadcast %cst_38 : f32 to vector<1x512xf32>
    %100 = arith.cmpf ole, %20, %99 : vector<1x512xf32>
    %101 = arith.andi %98, %100 : vector<1x512xi1>
    %cst_39 = arith.constant 0.000000e+00 : f32
    %102 = vector.shape_cast %101 : vector<1x512xi1> to vector<1x512xi1>
    %103 = vector.broadcast %102 : vector<1x512xi1> to vector<8x512xi1>
    %104 = vector.broadcast %cst_39 : f32 to vector<8x512xf32>
    %105 = arith.select %103, %90, %104 : vector<8x512xi1>, vector<8x512xf32>
    %c40 = arith.constant 40 : index
    %c0_40 = arith.constant 0 : index
    %106 = vector.load %arg6[%c40, %c0_40] : memref<72x512xf32, #tpu.memory_space<vmem>>, vector<8x512xf32>
    tpu.vector_store %arg6[%c40, %c0_40], %105 {strides = array<i32>} : memref<72x512xf32, #tpu.memory_space<vmem>>, vector<8x512xf32>,
    %c497_i32 = arith.constant 497 : i32
    %107 = tpu.dynamic_rotate %2 by %c497_i32 dim 1 : vector<8x512xf32>, i32 -> vector<8x512xf32>
    %cst_41 = arith.constant 1.000000e+00 : f32
    %108 = vector.broadcast %cst_41 : f32 to vector<1x512xf32>
    %109 = arith.cmpf oge, %12, %108 : vector<1x512xf32>
    %cst_42 = arith.constant 1.600000e+01 : f32
    %110 = vector.broadcast %cst_42 : f32 to vector<1x512xf32>
    %111 = arith.cmpf ole, %12, %110 : vector<1x512xf32>
    %112 = arith.andi %109, %111 : vector<1x512xi1>
    %cst_43 = arith.constant -1.000000e+00 : f32
    %113 = vector.broadcast %cst_43 : f32 to vector<1x512xf32>
    %114 = arith.cmpf oge, %20, %113 : vector<1x512xf32>
    %115 = arith.andi %112, %114 : vector<1x512xi1>
    %cst_44 = arith.constant 1.400000e+01 : f32
    %116 = vector.broadcast %cst_44 : f32 to vector<1x512xf32>
    %117 = arith.cmpf ole, %20, %116 : vector<1x512xf32>
    %118 = arith.andi %115, %117 : vector<1x512xi1>
    %cst_45 = arith.constant 0.000000e+00 : f32
    %119 = vector.shape_cast %118 : vector<1x512xi1> to vector<1x512xi1>
    %120 = vector.broadcast %119 : vector<1x512xi1> to vector<8x512xi1>
    %121 = vector.broadcast %cst_45 : f32 to vector<8x512xf32>
    %122 = arith.select %120, %107, %121 : vector<8x512xi1>, vector<8x512xf32>
    %c48 = arith.constant 48 : index
    %c0_46 = arith.constant 0 : index
    %123 = vector.load %arg6[%c48, %c0_46] : memref<72x512xf32, #tpu.memory_space<vmem>>, vector<8x512xf32>
    tpu.vector_store %arg6[%c48, %c0_46], %122 {strides = array<i32>} : memref<72x512xf32, #tpu.memory_space<vmem>>, vector<8x512xf32>,
    %c496_i32 = arith.constant 496 : i32
    %124 = tpu.dynamic_rotate %2 by %c496_i32 dim 1 : vector<8x512xf32>, i32 -> vector<8x512xf32>
    %cst_47 = arith.constant 0.000000e+00 : f32
    %125 = vector.broadcast %cst_47 : f32 to vector<1x512xf32>
    %126 = arith.cmpf oge, %12, %125 : vector<1x512xf32>
    %cst_48 = arith.constant 1.500000e+01 : f32
    %127 = vector.broadcast %cst_48 : f32 to vector<1x512xf32>
    %128 = arith.cmpf ole, %12, %127 : vector<1x512xf32>
    %129 = arith.andi %126, %128 : vector<1x512xi1>
    %cst_49 = arith.constant -1.000000e+00 : f32
    %130 = vector.broadcast %cst_49 : f32 to vector<1x512xf32>
    %131 = arith.cmpf oge, %20, %130 : vector<1x512xf32>
    %132 = arith.andi %129, %131 : vector<1x512xi1>
    %cst_50 = arith.constant 1.400000e+01 : f32
    %133 = vector.broadcast %cst_50 : f32 to vector<1x512xf32>
    %134 = arith.cmpf ole, %20, %133 : vector<1x512xf32>
    %135 = arith.andi %132, %134 : vector<1x512xi1>
    %cst_51 = arith.constant 0.000000e+00 : f32
    %136 = vector.shape_cast %135 : vector<1x512xi1> to vector<1x512xi1>
    %137 = vector.broadcast %136 : vector<1x512xi1> to vector<8x512xi1>
    %138 = vector.broadcast %cst_51 : f32 to vector<8x512xf32>
    %139 = arith.select %137, %124, %138 : vector<8x512xi1>, vector<8x512xf32>
    %c56 = arith.constant 56 : index
    %c0_52 = arith.constant 0 : index
    %140 = vector.load %arg6[%c56, %c0_52] : memref<72x512xf32, #tpu.memory_space<vmem>>, vector<8x512xf32>
    tpu.vector_store %arg6[%c56, %c0_52], %139 {strides = array<i32>} : memref<72x512xf32, #tpu.memory_space<vmem>>, vector<8x512xf32>,
    %c495_i32 = arith.constant 495 : i32
    %141 = tpu.dynamic_rotate %2 by %c495_i32 dim 1 : vector<8x512xf32>, i32 -> vector<8x512xf32>
    %cst_53 = arith.constant -1.000000e+00 : f32
    %142 = vector.broadcast %cst_53 : f32 to vector<1x512xf32>
    %143 = arith.cmpf oge, %12, %142 : vector<1x512xf32>
    %cst_54 = arith.constant 1.400000e+01 : f32
    %144 = vector.broadcast %cst_54 : f32 to vector<1x512xf32>
    %145 = arith.cmpf ole, %12, %144 : vector<1x512xf32>
    %146 = arith.andi %143, %145 : vector<1x512xi1>
    %cst_55 = arith.constant -1.000000e+00 : f32
    %147 = vector.broadcast %cst_55 : f32 to vector<1x512xf32>
    %148 = arith.cmpf oge, %20, %147 : vector<1x512xf32>
    %149 = arith.andi %146, %148 : vector<1x512xi1>
    %cst_56 = arith.constant 1.400000e+01 : f32
    %150 = vector.broadcast %cst_56 : f32 to vector<1x512xf32>
    %151 = arith.cmpf ole, %20, %150 : vector<1x512xf32>
    %152 = arith.andi %149, %151 : vector<1x512xi1>
    %cst_57 = arith.constant 0.000000e+00 : f32
    %153 = vector.shape_cast %152 : vector<1x512xi1> to vector<1x512xi1>
    %154 = vector.broadcast %153 : vector<1x512xi1> to vector<8x512xi1>
    %155 = vector.broadcast %cst_57 : f32 to vector<8x512xf32>
    %156 = arith.select %154, %141, %155 : vector<8x512xi1>, vector<8x512xf32>
    %c64 = arith.constant 64 : index
    %c0_58 = arith.constant 0 : index
    %157 = vector.load %arg6[%c64, %c0_58] : memref<72x512xf32, #tpu.memory_space<vmem>>, vector<8x512xf32>
    tpu.vector_store %arg6[%c64, %c0_58], %156 {strides = array<i32>} : memref<72x512xf32, #tpu.memory_space<vmem>>, vector<8x512xf32>,
    %c0_59 = arith.constant 0 : index
    %c0_60 = arith.constant 0 : index
    %158 = vector.load %arg3[%c0_59, %c0_60] : memref<16x72xbf16, #tpu.memory_space<vmem>>, vector<16x72xbf16>
    %c0_61 = arith.constant 0 : index
    %c0_62 = arith.constant 0 : index
    %159 = vector.load %arg6[%c0_61, %c0_62] : memref<72x512xf32, #tpu.memory_space<vmem>>, vector<72x512xf32>
    %160 = arith.truncf %159 : vector<72x512xf32> to vector<72x512xbf16>
    %cst_63 = arith.constant dense<0.000000e+00> : vector<16x512xf32>
    %161 = tpu.matmul %158, %160, %cst_63 {dimension_numbers = #tpu.dot_dimension_numbers<[1], [0], [0], [1], [0, 0, 1, 1], [], []>} : vector<16x72xbf16>, vector<72x512xbf16>, vector<16x512xf32> -> vector<16x512xf32>
    %c0_64 = arith.constant 0 : index
    %c0_65 = arith.constant 0 : index
    %162 = vector.load %arg4[%c0_64, %c0_65] : memref<16x1xf32, #tpu.memory_space<vmem>>, vector<16x1xf32>
    %163 = vector.broadcast %162 : vector<16x1xf32> to vector<16x512xf32>
    %164 = arith.addf %161, %163 : vector<16x512xf32>
    %165 = vector.extract_strided_slice %164 {offsets = [0, 0], sizes = [16, 256], strides = [1, 1]} : vector<16x512xf32> to vector<16x256xf32>
    %166 = vector.shape_cast %165 : vector<16x256xf32> to vector<2x8x256xf32>
    %c0_66 = arith.constant 0 : index
    %c0_67 = arith.constant 0 : index
    %c0_68 = arith.constant 0 : index
    %c0_69 = arith.constant 0 : index
    %167 = vector.load %arg5[%c0_66, %c0_67, %c0_68, %c0_69] : memref<2x2x8x256xf32, #tpu.memory_space<vmem>>, vector<2x1x8x256xf32>
    %168 = vector.shape_cast %167 : vector<2x1x8x256xf32> to vector<2x8x256xf32>
    %169 = vector.shape_cast %166 : vector<2x8x256xf32> to vector<2x1x8x256xf32>
    tpu.vector_store %arg5[%c0_66, %c0_67, %c0_68, %c0_69], %169 {strides = array<i32>} : memref<2x2x8x256xf32, #tpu.memory_space<vmem>>, vector<2x1x8x256xf32>,
    %170 = vector.extract_strided_slice %164 {offsets = [0, 256], sizes = [16, 256], strides = [1, 1]} : vector<16x512xf32> to vector<16x256xf32>
    %171 = vector.shape_cast %170 : vector<16x256xf32> to vector<2x8x256xf32>
    %c0_70 = arith.constant 0 : index
    %c1 = arith.constant 1 : index
    %c0_71 = arith.constant 0 : index
    %c0_72 = arith.constant 0 : index
    %172 = vector.load %arg5[%c0_70, %c1, %c0_71, %c0_72] : memref<2x2x8x256xf32, #tpu.memory_space<vmem>>, vector<2x1x8x256xf32>
    %173 = vector.shape_cast %172 : vector<2x1x8x256xf32> to vector<2x8x256xf32>
    %174 = vector.shape_cast %171 : vector<2x8x256xf32> to vector<2x1x8x256xf32>
    tpu.vector_store %arg5[%c0_70, %c1, %c0_71, %c0_72], %174 {strides = array<i32>} : memref<2x2x8x256xf32, #tpu.memory_space<vmem>>, vector<2x1x8x256xf32>,
    return
  }
  func.func @transform_0(%arg0: i32) -> (i32, i32) {
    %c0_i32 = arith.constant 0 : i32
    %c0_i32_0 = arith.constant 0 : i32
    %c0_i32_1 = arith.constant 0 : i32
    return %c0_i32, %c0_i32_0 : i32, i32
  }
  func.func @transform_1(%arg0: i32) -> (i32, i32) {
    %c0_i32 = arith.constant 0 : i32
    %c0_i32_0 = arith.constant 0 : i32
    return %c0_i32, %arg0 : i32, i32
  }
  func.func @transform_2(%arg0: i32) -> (i32, i32) {
    %c0_i32 = arith.constant 0 : i32
    %c0_i32_0 = arith.constant 0 : i32
    %c0_i32_1 = arith.constant 0 : i32
    return %c0_i32, %c0_i32_0 : i32, i32
  }
  func.func @transform_3(%arg0: i32) -> (i32, i32) {
    %c0_i32 = arith.constant 0 : i32
    %c0_i32_0 = arith.constant 0 : i32
    %c0_i32_1 = arith.constant 0 : i32
    return %c0_i32, %c0_i32_0 : i32, i32
  }
  func.func @transform_4(%arg0: i32) -> (i32, i32, i32, i32) {
    %c0_i32 = arith.constant 0 : i32
    %c0_i32_0 = arith.constant 0 : i32
    %c0_i32_1 = arith.constant 0 : i32
    %c0_i32_2 = arith.constant 0 : i32
    return %c0_i32, %arg0, %c0_i32_0, %c0_i32_1 : i32, i32, i32, i32
  }
}

</mosaic_0001>

<bundles_post_ra>
// kernel: tile.8
= control target key start
LH: loop header
LB: loop body
LE: loop exit
PB: predicated region body
PF: predicated region fallthrough
CT: control target
= control target key end

     0   :  { %s22_s0 = inlined_call_operand.vmem [shape: f32[8], index: 0, kind: input, shape index: {}]   ;;  %s23_s1 = inlined_call_operand.vmem [shape: f32[2,8], index: 1, kind: output, shape index: {}]  }
   0x1   :  { %v4_v0 = vld [vmem:[%s22_s0] ss:$0 sm:$0xff] }
   0x2   :  { %5 = vst [vmem:[%s23_s1] sm:$0x3] %v4_v0 }

// kernel: tile.0
= control target key start
LH: loop header
LB: loop body
LE: loop exit
PB: predicated region body
PF: predicated region fallthrough
CT: control target
= control target key end

     0   :  { %s67_s8 = smov 125   ;;  %vm8_vm0 = vcmask 7168   ;;  %s68_s11 = smov 126   ;;  %s118_s0 = inlined_call_operand.vmem [shape: f32[2,8], index: 0, kind: input, shape index: {}]   ;;  %s119_s1 = inlined_call_operand.vmem [shape: f32[16,1], index: 1, kind: output, shape index: {}]  }
   0x1   :  { %v5_v0 = vld [vmem:[%s118_s0] sm:$0x3]  ;;  %s66_s0 = smov 127   ;;  %s69_s12 = smov 124  }
   0x2   :  { %6 = vst [vmem:[#allocation0] sm:$0x3] %v5_v0  ;;  %s70_s13 = smov 123   ;;  %s71_s14 = smov 122  }
   0x3   :  { %s72_s15 = smov 121  }
   0x9   :  { %v10_v1 = vld [vmem:[#allocation0] sm:$0x3]  }
   0xa   :  { %v22_v2 = vld [vmem:[#allocation0] sm:$0x3]   ;;  %11 = vrot.lane.b32.xlu0 %v10_v1, %s66_s0 }
   0xb   :  { %23 = vrot.lane.b32.xlu1 %v22_v2, %s67_s8  ;;  %v16_v3 = vld [vmem:[#allocation0] sm:$0x3]  }
   0xc   :  { %v28_v4 = vld [vmem:[#allocation0] sm:$0x3]  }
   0xd   :  { %v7_v5 = vld [vmem:[#allocation0] sm:$0x3]  }
   0xe   :  { %9 = vst.msk [vmem:[%s119_s1] ss:$8 sm:$0x3] %vm8_vm0, %v7_v5   ;;  %17 = vrot.lane.b32.xlu0 %v16_v3, %s68_s11  ;;  %v34_v6 = vld [vmem:[#allocation0] sm:$0x3]  }
   0xf   :  { %29 = vrot.lane.b32.xlu1 %v28_v4, %s69_s12  ;;  %v40_v7 = vld [vmem:[#allocation0] sm:$0x3]  }
  0x10   :  { %v46_v8 = vld [vmem:[#allocation0] sm:$0x3]  }
  0x12   :  { %35 = vrot.lane.b32.xlu0 %v34_v6, %s70_s13 }
  0x13   :  { %41 = vrot.lane.b32.xlu1 %v40_v7, %s71_s14 }
  0x16   :  { %47 = vrot.lane.b32.xlu0 %v46_v8, %s72_s15 }
  0x7c   :  { %v12_v9 = vpop.permute.xlu0 %11  }
  0x7d   :  { %v24_v10 = vpop.permute.xlu1 %23   ;;  %52 = vst.msk [vmem:[%s119_s1 + $0x1] ss:$8 sm:$0x3] %vm8_vm0, %v12_v9  }
  0x7e   :  { %54 = vst.msk [vmem:[%s119_s1 + $0x3] ss:$8 sm:$0x3] %vm8_vm0, %v24_v10  }
  0x80   :  { %v18_v11 = vpop.permute.xlu0 %17  }
  0x81   :  { %v30_v12 = vpop.permute.xlu1 %29   ;;  %53 = vst.msk [vmem:[%s119_s1 + $0x2] ss:$8 sm:$0x3] %vm8_vm0, %v18_v11  }
  0x82   :  { %55 = vst.msk [vmem:[%s119_s1 + $0x4] ss:$8 sm:$0x3] %vm8_vm0, %v30_v12  }
  0x84   :  { %v36_v13 = vpop.permute.xlu0 %35  }
  0x85   :  { %v42_v14 = vpop.permute.xlu1 %41   ;;  %56 = vst.msk [vmem:[%s119_s1 + $0x5] ss:$8 sm:$0x3] %vm8_vm0, %v36_v13  }
  0x86   :  { %57 = vst.msk [vmem:[%s119_s1 + $0x6] ss:$8 sm:$0x3] %vm8_vm0, %v42_v14  }
  0x88   :  { %v48_v15 = vpop.permute.xlu0 %47  }
  0x89   :  { %58 = vst.msk [vmem:[%s119_s1 + $0x7] ss:$8 sm:$0x3] %vm8_vm0, %v48_v15  }

// kernel: group_conv_forward.1
= control target key start
LH: loop header
LB: loop body
LE: loop exit
PB: predicated region body
PF: predicated region fallthrough
CT: control target
= control target key end

     0   :  { %s1926_s15 = smov 0   ;;  %s1928_s16 = smov 0   ;;  %s3011_s0 = inlined_call_operand.vmem [shape: bf16[8,256], index: 0, kind: input, shape index: {}]   ;;  %s3012_s1 = inlined_call_operand.vmem [shape: bf16[256,1024], index: 1, kind: input, shape index: {}]   ;;  %s3013_s2 = inlined_call_operand.vmem [shape: bf16[16,72], index: 2, kind: input, shape index: {}]   ;;  %s3014_s3 = inlined_call_operand.vmem [shape: f32[16,1], index: 3, kind: input, shape index: {}]   ;;  %s3015_s4 = inlined_call_operand.vmem [shape: f32[2,4,8,256], index: 4, kind: output, shape index: {}]  }
   0x1   :  { %s1930_s17 = smov 0  }
   0x2 LB: > { %s1510_s18 = sadd.s32 4294967295, %s1889_s17   ;;  %s1943_s19 = sadd.s32 1, %s1889_s17   ;;  %s1889_s17 = sphi %s1930_s17, %s3356_s17   ;;  %s1885_s16 = sphi %s1928_s16, %s3355_s16   ;;  %s1881_s15 = sphi %s1926_s15, %s3354_s15  }
   0x3   : > { %s39_s20 = ssub.s32 %s1889_s17, %s1943_s19  ;;  %s42_s21 = sadd.s32 1, %s1885_s16 }
   0x4   : > { %p40_p0 = scmp.eq.s32.totalorder %s39_s20, 0  ;;  %p49_p1 = scmp.ne.s32.totalorder %s1885_s16, %s1881_s15 }
   0x5   : > { %p50_p2 = scmp.eq.s32.totalorder %s1889_s17, 0  ;;  %p121_p3 = scmp.eq.s32.totalorder %s1510_s18, 1 }
   0x6   : > { %s1954_s22 = scalar_select %p40_p0, %s1885_s16, %s42_s21  }
   0x7   : > { %p51_p4 = por %p50_p2, %p49_p1  ;;  %p1956_p5 = por %p121_p3, %p49_p1 }
   0x8   : > { %p1513_p6 = scmp.ge.s32.totalorder %s1889_s17, 2 }
   0xa   : > { %152 = sbr.rel (%p1513_p6) target bundleno = 51 (0x33), region = 28 }
   0xf   : > { %155 = sbr.rel (!%p51_p4) target bundleno = 51 (0x33), region = 32  ;;  %s157_s24 = sand.u32 (%p51_p4), 1, %s1885_s16  }
  0x10   : > { %s1601_s25 = sshll.u32 (%p51_p4), %s1889_s17, 4  ;;  %s1514_s26 = sshll.u32 (%p51_p4), %s157_s24, 9 }
  0x11   : > { %s1966_s29 = scalar_lea.vmem (%p51_p4), %s3012_s1, %s1601_s25  ;;  %s1971_s30 = scalar_lea.vmem (%p51_p4), [#allocation3], %s1514_s26 }
  0x12   : > { %v175_v0 = vld [vmem:[%s1966_s29] sm:$0xff] (%p51_p4)  ;;  %v177_v1 = vld [vmem:[%s1966_s29 + $0x8] sm:$0xff] (%p51_p4) }
  0x13   : > { %v179_v2 = vld [vmem:[%s1966_s29 + $0x20] sm:$0xff] (%p51_p4)  ;;  %176 = vst [vmem:[%s1971_s30] sm:$0xff] (%p51_p4), %v175_v0  ;;  %178 = vst [vmem:[%s1971_s30 + $0x8] sm:$0xff] (%p51_p4), %v177_v1  ;;  %v181_v3 = vld [vmem:[%s1966_s29 + $0x28] sm:$0xff] (%p51_p4) }
  0x14   : > { %180 = vst [vmem:[%s1971_s30 + $0x10] sm:$0xff] %v179_v2  ;;  %v183_v4 = vld [vmem:[%s1966_s29 + $0x40] sm:$0xff]  ;;  %v185_v5 = vld [vmem:[%s1966_s29 + $0x48] sm:$0xff]  ;;  %182 = vst [vmem:[%s1971_s30 + $0x18] sm:$0xff] %v181_v3 }
  0x15   : > { %184 = vst [vmem:[%s1971_s30 + $0x20] sm:$0xff] %v183_v4  ;;  %186 = vst [vmem:[%s1971_s30 + $0x28] sm:$0xff] %v185_v5  ;;  %v187_v6 = vld [vmem:[%s1966_s29 + $0x60] sm:$0xff]  ;;  %v189_v7 = vld [vmem:[%s1966_s29 + $0x68] sm:$0xff] }
  0x16   : > { %v191_v8 = vld [vmem:[%s1966_s29 + $0x80] sm:$0xff]  ;;  %188 = vst [vmem:[%s1971_s30 + $0x30] sm:$0xff] %v187_v6  ;;  %190 = vst [vmem:[%s1971_s30 + $0x38] sm:$0xff] %v189_v7  ;;  %v193_v9 = vld [vmem:[%s1966_s29 + $0x88] sm:$0xff] }
  0x17   : > { %192 = vst [vmem:[%s1971_s30 + $0x40] sm:$0xff] %v191_v8  ;;  %v195_v10 = vld [vmem:[%s1966_s29 + $0xa0] sm:$0xff]  ;;  %v197_v11 = vld [vmem:[%s1966_s29 + $0xa8] sm:$0xff]  ;;  %194 = vst [vmem:[%s1971_s30 + $0x48] sm:$0xff] %v193_v9 }
  0x18   : > { %196 = vst [vmem:[%s1971_s30 + $0x50] sm:$0xff] %v195_v10  ;;  %198 = vst [vmem:[%s1971_s30 + $0x58] sm:$0xff] %v197_v11  ;;  %v199_v12 = vld [vmem:[%s1966_s29 + $0xc0] sm:$0xff]  ;;  %v201_v13 = vld [vmem:[%s1966_s29 + $0xc8] sm:$0xff] }
  0x19   : > { %v203_v14 = vld [vmem:[%s1966_s29 + $0xe0] sm:$0xff]  ;;  %200 = vst [vmem:[%s1971_s30 + $0x60] sm:$0xff] %v199_v12  ;;  %202 = vst [vmem:[%s1971_s30 + $0x68] sm:$0xff] %v201_v13  ;;  %v205_v15 = vld [vmem:[%s1966_s29 + $0xe8] sm:$0xff] }
  0x1a   : > { %204 = vst [vmem:[%s1971_s30 + $0x70] sm:$0xff] %v203_v14  ;;  %v207_v16 = vld [vmem:[%s1966_s29 + $0x100] sm:$0xff]  ;;  %v209_v17 = vld [vmem:[%s1966_s29 + $0x108] sm:$0xff]  ;;  %206 = vst [vmem:[%s1971_s30 + $0x78] sm:$0xff] %v205_v15 }
  0x1b   : > { %208 = vst [vmem:[%s1971_s30 + $0x80] sm:$0xff] %v207_v16  ;;  %210 = vst [vmem:[%s1971_s30 + $0x88] sm:$0xff] %v209_v17  ;;  %v211_v18 = vld [vmem:[%s1966_s29 + $0x120] sm:$0xff]  ;;  %v213_v19 = vld [vmem:[%s1966_s29 + $0x128] sm:$0xff] }
  0x1c   : > { %v215_v20 = vld [vmem:[%s1966_s29 + $0x140] sm:$0xff]  ;;  %212 = vst [vmem:[%s1971_s30 + $0x90] sm:$0xff] %v211_v18  ;;  %214 = vst [vmem:[%s1971_s30 + $0x98] sm:$0xff] %v213_v19  ;;  %v217_v21 = vld [vmem:[%s1966_s29 + $0x148] sm:$0xff] }
  0x1d   : > { %216 = vst [vmem:[%s1971_s30 + $0xa0] sm:$0xff] %v215_v20  ;;  %v219_v22 = vld [vmem:[%s1966_s29 + $0x160] sm:$0xff]  ;;  %v221_v23 = vld [vmem:[%s1966_s29 + $0x168] sm:$0xff]  ;;  %218 = vst [vmem:[%s1971_s30 + $0xa8] sm:$0xff] %v217_v21 }
  0x1e   : > { %220 = vst [vmem:[%s1971_s30 + $0xb0] sm:$0xff] %v219_v22  ;;  %222 = vst [vmem:[%s1971_s30 + $0xb8] sm:$0xff] %v221_v23  ;;  %v223_v24 = vld [vmem:[%s1966_s29 + $0x180] sm:$0xff]  ;;  %v225_v25 = vld [vmem:[%s1966_s29 + $0x188] sm:$0xff] }
  0x1f   : > { %v227_v26 = vld [vmem:[%s1966_s29 + $0x1a0] sm:$0xff]  ;;  %224 = vst [vmem:[%s1971_s30 + $0xc0] sm:$0xff] %v223_v24  ;;  %226 = vst [vmem:[%s1971_s30 + $0xc8] sm:$0xff] %v225_v25  ;;  %v229_v27 = vld [vmem:[%s1966_s29 + $0x1a8] sm:$0xff] }
  0x20   : > { %228 = vst [vmem:[%s1971_s30 + $0xd0] sm:$0xff] %v227_v26  ;;  %v231_v28 = vld [vmem:[%s1966_s29 + $0x1c0] sm:$0xff]  ;;  %v233_v29 = vld [vmem:[%s1966_s29 + $0x1c8] sm:$0xff]  ;;  %230 = vst [vmem:[%s1971_s30 + $0xd8] sm:$0xff] %v229_v27 }
  0x21   : > { %232 = vst [vmem:[%s1971_s30 + $0xe0] sm:$0xff] %v231_v28  ;;  %234 = vst [vmem:[%s1971_s30 + $0xe8] sm:$0xff] %v233_v29  ;;  %v235_v30 = vld [vmem:[%s1966_s29 + $0x1e0] sm:$0xff]  ;;  %v237_v31 = vld [vmem:[%s1966_s29 + $0x1e8] sm:$0xff] }
  0x22   : > { %v239_v32 = vld [vmem:[%s1966_s29 + $0x200] sm:$0xff]  ;;  %236 = vst [vmem:[%s1971_s30 + $0xf0] sm:$0xff] %v235_v30  ;;  %238 = vst [vmem:[%s1971_s30 + $0xf8] sm:$0xff] %v237_v31  ;;  %v241_v33 = vld [vmem:[%s1966_s29 + $0x208] sm:$0xff] }
  0x23   : > { %240 = vst [vmem:[%s1971_s30 + $0x100] sm:$0xff] %v239_v32  ;;  %v243_v34 = vld [vmem:[%s1966_s29 + $0x220] sm:$0xff]  ;;  %v245_v35 = vld [vmem:[%s1966_s29 + $0x228] sm:$0xff]  ;;  %242 = vst [vmem:[%s1971_s30 + $0x108] sm:$0xff] %v241_v33 }
  0x24   : > { %244 = vst [vmem:[%s1971_s30 + $0x110] sm:$0xff] %v243_v34  ;;  %246 = vst [vmem:[%s1971_s30 + $0x118] sm:$0xff] %v245_v35  ;;  %v247_v36 = vld [vmem:[%s1966_s29 + $0x240] sm:$0xff]  ;;  %v249_v37 = vld [vmem:[%s1966_s29 + $0x248] sm:$0xff] }
  0x25   : > { %v251_v38 = vld [vmem:[%s1966_s29 + $0x260] sm:$0xff]  ;;  %248 = vst [vmem:[%s1971_s30 + $0x120] sm:$0xff] %v247_v36  ;;  %250 = vst [vmem:[%s1971_s30 + $0x128] sm:$0xff] %v249_v37  ;;  %v253_v39 = vld [vmem:[%s1966_s29 + $0x268] sm:$0xff] }
  0x26   : > { %252 = vst [vmem:[%s1971_s30 + $0x130] sm:$0xff] %v251_v38  ;;  %v255_v40 = vld [vmem:[%s1966_s29 + $0x280] sm:$0xff]  ;;  %v257_v41 = vld [vmem:[%s1966_s29 + $0x288] sm:$0xff]  ;;  %254 = vst [vmem:[%s1971_s30 + $0x138] sm:$0xff] %v253_v39 }
  0x27   : > { %256 = vst [vmem:[%s1971_s30 + $0x140] sm:$0xff] %v255_v40  ;;  %258 = vst [vmem:[%s1971_s30 + $0x148] sm:$0xff] %v257_v41  ;;  %v259_v42 = vld [vmem:[%s1966_s29 + $0x2a0] sm:$0xff]  ;;  %v261_v43 = vld [vmem:[%s1966_s29 + $0x2a8] sm:$0xff] }
  0x28   : > { %v263_v44 = vld [vmem:[%s1966_s29 + $0x2c0] sm:$0xff]  ;;  %260 = vst [vmem:[%s1971_s30 + $0x150] sm:$0xff] %v259_v42  ;;  %262 = vst [vmem:[%s1971_s30 + $0x158] sm:$0xff] %v261_v43  ;;  %v265_v45 = vld [vmem:[%s1966_s29 + $0x2c8] sm:$0xff] }
  0x29   : > { %264 = vst [vmem:[%s1971_s30 + $0x160] sm:$0xff] %v263_v44  ;;  %v267_v46 = vld [vmem:[%s1966_s29 + $0x2e0] sm:$0xff]  ;;  %v269_v47 = vld [vmem:[%s1966_s29 + $0x2e8] sm:$0xff]  ;;  %266 = vst [vmem:[%s1971_s30 + $0x168] sm:$0xff] %v265_v45 }
  0x2a   : > { %268 = vst [vmem:[%s1971_s30 + $0x170] sm:$0xff] %v267_v46  ;;  %270 = vst [vmem:[%s1971_s30 + $0x178] sm:$0xff] %v269_v47  ;;  %v271_v48 = vld [vmem:[%s1966_s29 + $0x300] sm:$0xff]  ;;  %v273_v49 = vld [vmem:[%s1966_s29 + $0x308] sm:$0xff] }
  0x2b   : > { %v275_v50 = vld [vmem:[%s1966_s29 + $0x320] sm:$0xff]  ;;  %272 = vst [vmem:[%s1971_s30 + $0x180] sm:$0xff] %v271_v48  ;;  %274 = vst [vmem:[%s1971_s30 + $0x188] sm:$0xff] %v273_v49  ;;  %v277_v51 = vld [vmem:[%s1966_s29 + $0x328] sm:$0xff] }
  0x2c   : > { %276 = vst [vmem:[%s1971_s30 + $0x190] sm:$0xff] %v275_v50  ;;  %v279_v52 = vld [vmem:[%s1966_s29 + $0x340] sm:$0xff]  ;;  %v281_v53 = vld [vmem:[%s1966_s29 + $0x348] sm:$0xff]  ;;  %278 = vst [vmem:[%s1971_s30 + $0x198] sm:$0xff] %v277_v51 }
  0x2d   : > { %280 = vst [vmem:[%s1971_s30 + $0x1a0] sm:$0xff] %v279_v52  ;;  %282 = vst [vmem:[%s1971_s30 + $0x1a8] sm:$0xff] %v281_v53  ;;  %v283_v54 = vld [vmem:[%s1966_s29 + $0x360] sm:$0xff]  ;;  %v285_v55 = vld [vmem:[%s1966_s29 + $0x368] sm:$0xff] }
  0x2e   : > { %v287_v56 = vld [vmem:[%s1966_s29 + $0x380] sm:$0xff]  ;;  %284 = vst [vmem:[%s1971_s30 + $0x1b0] sm:$0xff] %v283_v54  ;;  %286 = vst [vmem:[%s1971_s30 + $0x1b8] sm:$0xff] %v285_v55  ;;  %v289_v57 = vld [vmem:[%s1966_s29 + $0x388] sm:$0xff] }
  0x2f   : > { %288 = vst [vmem:[%s1971_s30 + $0x1c0] sm:$0xff] %v287_v56  ;;  %v291_v58 = vld [vmem:[%s1966_s29 + $0x3a0] sm:$0xff]  ;;  %v293_v59 = vld [vmem:[%s1966_s29 + $0x3a8] sm:$0xff]  ;;  %290 = vst [vmem:[%s1971_s30 + $0x1c8] sm:$0xff] %v289_v57 }
  0x30   : > { %292 = vst [vmem:[%s1971_s30 + $0x1d0] sm:$0xff] %v291_v58  ;;  %294 = vst [vmem:[%s1971_s30 + $0x1d8] sm:$0xff] %v293_v59  ;;  %v295_v60 = vld [vmem:[%s1966_s29 + $0x3c0] sm:$0xff]  ;;  %v297_v61 = vld [vmem:[%s1966_s29 + $0x3c8] sm:$0xff] }
  0x31   : > { %v299_v62 = vld [vmem:[%s1966_s29 + $0x3e0] sm:$0xff]  ;;  %296 = vst [vmem:[%s1971_s30 + $0x1e0] sm:$0xff] %v295_v60  ;;  %298 = vst [vmem:[%s1971_s30 + $0x1e8] sm:$0xff] %v297_v61  ;;  %v301_v63 = vld [vmem:[%s1966_s29 + $0x3e8] sm:$0xff] }
  0x32   : > { %300 = vst [vmem:[%s1971_s30 + $0x1f0] sm:$0xff] %v299_v62  ;;  %302 = vst [vmem:[%s1971_s30 + $0x1f8] sm:$0xff] %v301_v63 }
  0x33 PF: > { %p1517_p7 = scmp.ge.s32.totalorder %s1889_s17, 1  ;;  %p307_p8 = scmp.lt.s32.totalorder %s1889_s17, 3 }
  0x35   : > { %p308_p9 = pnand %p1517_p7, %p307_p8 }
  0x36   : > { %s314_s5 = sand.u32 (!%p308_p9), 1, %s1881_s15   ;;  %s1891_s10 = smov (!%p308_p9), 113  }
  0x37   : > { %311 = sbr.rel (%p308_p9) target bundleno = 716 (0x2cc), region = 55  ;;  %s1518_s8 = sshll.u32 (!%p308_p9), %s314_s5, 9 }
  0x38   : > { %s2110_s9 = scalar_lea.vmem (!%p308_p9), [#allocation3], %s1518_s8  ;;  %s1892_s11 = smov (!%p308_p9), 111  }
  0x39   : > { %s1893_s12 = smov (!%p308_p9), 112   ;;  %s1894_s13 = smov (!%p308_p9), 127  }
  0x3a   : > { %s1895_s14 = smov (!%p308_p9), 15   ;;  %s1896_s20 = smov (!%p308_p9), 1  }
  0x3b   : > { %s1898_s21 = smov (!%p308_p9), 17   ;;  %s1899_s24 = smov (!%p308_p9), 16  }
  0x3c   : > { %v2104_v0 = vld [vmem:[%s3011_s0] sm:$0xff]  ;;  %v1770_v3 = vld [vmem:[%s2110_s9 + $0xec] ss:$16 sps:$4 sm:$0xff]   ;;  %v1773_v5 = vld [vmem:[%s2110_s9 + $0xe8] ss:$16 sps:$4 sm:$0xff]   ;;  %s1519_s6 = sshll.u32 %s314_s5, 6 }
  0x3d   : > { %v1521_v1 = vcombine.high %v2104_v0, %v2104_v0  ;;  %v1768_v2 = vld [vmem:[%s2110_s9 + $0xe4] ss:$16 sps:$4 sm:$0xff]   ;;  %v1772_v4 = vld [vmem:[%s2110_s9 + $0xe0] ss:$16 sps:$4 sm:$0xff]   ;;  %774 = vmatprep.subr.bf16.mxu1 %v1770_v3  ;;  %v1776_v7 = vld [vmem:[%s2110_s9 + $0xcc] ss:$16 sps:$4 sm:$0xff]   ;;  %v1520_v3 = vcombine.low %v2104_v0, %v2104_v0 }
  0x3e   : > { %733 = vmatprep.subr.bf16.mxu0 %v1768_v2  ;;  %v1774_v6 = vld [vmem:[%s2110_s9 + $0xc4] ss:$16 sps:$4 sm:$0xff]   ;;  %775 = vmatpush1.bf16.msra.mxu1 %v1773_v5  ;;  %v1778_v8 = vld [vmem:[%s2110_s9 + $0xc0] ss:$16 sps:$4 sm:$0xff]   ;;  %v1779_v9 = vld [vmem:[%s2110_s9 + $0xc8] ss:$16 sps:$4 sm:$0xff]  }
  0x3f   : > { %765 = vmatprep.mubr.bf16.mxu0 %v1521_v1  ;;  %806 = vmatprep.mubr.bf16.mxu1 %v1521_v1  ;;  %v1780_v10 = vld [vmem:[%s2110_s9 + $0xa4] ss:$16 sps:$4 sm:$0xff]   ;;  %v1782_v11 = vld [vmem:[%s2110_s9 + $0xac] ss:$16 sps:$4 sm:$0xff]   ;;  %v1784_v12 = vld [vmem:[%s2110_s9 + $0xa0] ss:$16 sps:$4 sm:$0xff]  }
  0x40   : > { %734 = vmatpush1.bf16.msra.mxu0 %v1772_v4  ;;  %776 = vmatprep.subr.bf16.mxu1 %v1776_v7  ;;  %v1785_v13 = vld [vmem:[%s2110_s9 + $0xa8] ss:$16 sps:$4 sm:$0xff]   ;;  %v1786_v14 = vld [vmem:[%s2110_s9 + $0x84] ss:$16 sps:$4 sm:$0xff]   ;;  %v1788_v15 = vld [vmem:[%s2110_s9 + $0x8c] ss:$16 sps:$4 sm:$0xff]  }
  0x41   : > { %735 = vmatprep.subr.bf16.mxu0 %v1774_v6  ;;  %v1790_v16 = vld [vmem:[%s2110_s9 + $0x80] ss:$16 sps:$4 sm:$0xff]   ;;  %v1791_v17 = vld [vmem:[%s2110_s9 + $0x88] ss:$16 sps:$4 sm:$0xff]   ;;  %v1792_v18 = vld [vmem:[%s2110_s9 + $0x64] ss:$16 sps:$4 sm:$0xff]  }
  0x42   : > { %777 = vmatpush1.bf16.msra.mxu1 %v1779_v9  ;;  %v1794_v19 = vld [vmem:[%s2110_s9 + $0x6c] ss:$16 sps:$4 sm:$0xff]   ;;  %v1796_v20 = vld [vmem:[%s2110_s9 + $0x60] ss:$16 sps:$4 sm:$0xff]   ;;  %v1797_v21 = vld [vmem:[%s2110_s9 + $0x68] ss:$16 sps:$4 sm:$0xff]  }
  0x43   : > { %778 = vmatprep.subr.bf16.mxu1 %v1782_v11  ;;  %v1798_v22 = vld [vmem:[%s2110_s9 + $0x44] ss:$16 sps:$4 sm:$0xff]   ;;  %v1800_v23 = vld [vmem:[%s2110_s9 + $0x4c] ss:$16 sps:$4 sm:$0xff]   ;;  %v1802_v24 = vld [vmem:[%s2110_s9 + $0x40] ss:$16 sps:$4 sm:$0xff]  }
  0x44   : > { %736 = vmatpush1.bf16.msra.mxu0 %v1778_v8  ;;  %v1803_v25 = vld [vmem:[%s2110_s9 + $0x48] ss:$16 sps:$4 sm:$0xff]   ;;  %v1804_v26 = vld [vmem:[%s2110_s9 + $0x24] ss:$16 sps:$4 sm:$0xff]   ;;  %v1806_v27 = vld [vmem:[%s2110_s9 + $0x2c] ss:$16 sps:$4 sm:$0xff]  }
  0x45   : > { %737 = vmatprep.subr.bf16.mxu0 %v1780_v10  ;;  %v1808_v28 = vld [vmem:[%s2110_s9 + $0x20] ss:$16 sps:$4 sm:$0xff]   ;;  %v1809_v29 = vld [vmem:[%s2110_s9 + $0x28] ss:$16 sps:$4 sm:$0xff]   ;;  %v1810_v30 = vld [vmem:[%s2110_s9 + $0x4] ss:$16 sps:$4 sm:$0xff]  }
  0x46   : > { %779 = vmatpush1.bf16.msra.mxu1 %v1785_v13  ;;  %v1812_v31 = vld [vmem:[%s2110_s9 + $0xc] ss:$16 sps:$4 sm:$0xff]   ;;  %v1814_v32 = vld [vmem:[%s2110_s9] ss:$16 sps:$4 sm:$0xff]   ;;  %v1815_v33 = vld [vmem:[%s2110_s9 + $0x8] ss:$16 sps:$4 sm:$0xff]  }
  0x47   : > { %780 = vmatprep.subr.bf16.mxu1 %v1788_v15  ;;  %v1816_v34 = vld [vmem:[%s2110_s9 + $0x1e4] ss:$16 sps:$4 sm:$0xff]   ;;  %v1818_v35 = vld [vmem:[%s2110_s9 + $0x1ec] ss:$16 sps:$4 sm:$0xff]   ;;  %v1820_v36 = vld [vmem:[%s2110_s9 + $0x1e0] ss:$16 sps:$4 sm:$0xff]  }
  0x48   : > { %738 = vmatpush1.bf16.msra.mxu0 %v1784_v12  ;;  %v1821_v37 = vld [vmem:[%s2110_s9 + $0x1e8] ss:$16 sps:$4 sm:$0xff]   ;;  %v1822_v38 = vld [vmem:[%s2110_s9 + $0x1c4] ss:$16 sps:$4 sm:$0xff]   ;;  %v1824_v39 = vld [vmem:[%s2110_s9 + $0x1cc] ss:$16 sps:$4 sm:$0xff]  }
  0x49   : > { %739 = vmatprep.subr.bf16.mxu0 %v1786_v14  ;;  %v1826_v40 = vld [vmem:[%s2110_s9 + $0x1c0] ss:$16 sps:$4 sm:$0xff]   ;;  %v1827_v41 = vld [vmem:[%s2110_s9 + $0x1c8] ss:$16 sps:$4 sm:$0xff]   ;;  %v1828_v42 = vld [vmem:[%s2110_s9 + $0x1a4] ss:$16 sps:$4 sm:$0xff]  }
  0x4a   : > { %781 = vmatpush1.bf16.msra.mxu1 %v1791_v17  ;;  %v1830_v43 = vld [vmem:[%s2110_s9 + $0x1ac] ss:$16 sps:$4 sm:$0xff]   ;;  %v1832_v44 = vld [vmem:[%s2110_s9 + $0x1a0] ss:$16 sps:$4 sm:$0xff]   ;;  %v1833_v45 = vld [vmem:[%s2110_s9 + $0x1a8] ss:$16 sps:$4 sm:$0xff]  }
  0x4b   : > { %782 = vmatprep.subr.bf16.mxu1 %v1794_v19  ;;  %v1834_v46 = vld [vmem:[%s2110_s9 + $0x184] ss:$16 sps:$4 sm:$0xff]   ;;  %v1836_v47 = vld [vmem:[%s2110_s9 + $0x18c] ss:$16 sps:$4 sm:$0xff]   ;;  %v1838_v48 = vld [vmem:[%s2110_s9 + $0x180] ss:$16 sps:$4 sm:$0xff]  }
  0x4c   : > { %740 = vmatpush1.bf16.msra.mxu0 %v1790_v16  ;;  %v1839_v49 = vld [vmem:[%s2110_s9 + $0x188] ss:$16 sps:$4 sm:$0xff]   ;;  %v1840_v50 = vld [vmem:[%s2110_s9 + $0x164] ss:$16 sps:$4 sm:$0xff]   ;;  %v1842_v51 = vld [vmem:[%s2110_s9 + $0x16c] ss:$16 sps:$4 sm:$0xff]   ;;  %v815_v16 = vlaneseq }
  0x4d   : > { %741 = vmatprep.subr.bf16.mxu0 %v1792_v18  ;;  %v1844_v52 = vld [vmem:[%s2110_s9 + $0x160] ss:$16 sps:$4 sm:$0xff]   ;;  %v1845_v53 = vld [vmem:[%s2110_s9 + $0x168] ss:$16 sps:$4 sm:$0xff]   ;;  %v1846_v54 = vld [vmem:[%s2110_s9 + $0x144] ss:$16 sps:$4 sm:$0xff]  }
  0x4e   : > { %783 = vmatpush1.bf16.msra.mxu1 %v1797_v21  ;;  %v1848_v55 = vld [vmem:[%s2110_s9 + $0x14c] ss:$16 sps:$4 sm:$0xff]   ;;  %v1850_v56 = vld [vmem:[%s2110_s9 + $0x140] ss:$16 sps:$4 sm:$0xff]   ;;  %v1851_v57 = vld [vmem:[%s2110_s9 + $0x148] ss:$16 sps:$4 sm:$0xff]  }
  0x4f   : > { %784 = vmatprep.subr.bf16.mxu1 %v1800_v23  ;;  %v1852_v58 = vld [vmem:[%s2110_s9 + $0x124] ss:$16 sps:$4 sm:$0xff]   ;;  %v1854_v59 = vld [vmem:[%s2110_s9 + $0x12c] ss:$16 sps:$4 sm:$0xff]   ;;  %v1856_v60 = vld [vmem:[%s2110_s9 + $0x120] ss:$16 sps:$4 sm:$0xff]  }
  0x50   : > { %742 = vmatpush1.bf16.msra.mxu0 %v1796_v20  ;;  %v1857_v61 = vld [vmem:[%s2110_s9 + $0x128] ss:$16 sps:$4 sm:$0xff]   ;;  %v1858_v62 = vld [vmem:[%s2110_s9 + $0x104] ss:$16 sps:$4 sm:$0xff]   ;;  %v1860_v63 = vld [vmem:[%s2110_s9 + $0x10c] ss:$16 sps:$4 sm:$0xff]  }
  0x51   : > { %743 = vmatprep.subr.bf16.mxu0 %v1798_v22  ;;  %v1862_v1 = vld [vmem:[%s2110_s9 + $0x100] ss:$16 sps:$4 sm:$0xff]   ;;  %v1863_v2 = vld [vmem:[%s2110_s9 + $0x108] ss:$16 sps:$4 sm:$0xff]   ;;  %v1897_v13 = vmov 0   ;;  %v2196_v17 = vand.u32 127, %v815_v16 }
  0x52   : > { %785 = vmatpush1.bf16.msra.mxu1 %v1803_v25  ;;  %1766 = vset.pattern.permute.xlu0 %v1897_v13  ;;  %v1283_v14 = vld [vmem:[%s3014_s3] sm:$0xff]  ;;  %v1284_v15 = vld [vmem:[%s3014_s3 + $0x8] sm:$0xff]  ;;  %v3079_v16 = vmov 0  ;;  %s2976_s7 = scalar_lea.vmem [#allocation4], %s1519_s6  ;;  %s1603_s15 = sshll.u32 (%p1956_p5), %s1510_s18, 5 }
  0x53   : > { %786 = vmatprep.subr.bf16.mxu1 %v1806_v27  ;;  %1767 = vset.pattern.permute.xlu1 %v1897_v13  ;;  %v817_v18 = vadd.s32 128, %v2196_v17  ;;  %v819_v19 = vadd.s32 384, %v2196_v17  ;;  %v818_v20 = vadd.s32 256, %v2196_v17  ;;  %v820_v21 = vcvt.s32.f32 %v2196_v17  ;;  %s1422_s9 = scalar_lea.vmem (%p1956_p5), %s3015_s4, %s1603_s15 }
  0x54   : > { %744 = vmatpush1.bf16.msra.mxu0 %v1802_v24 }
  0x55   : > { %745 = vmatprep.subr.bf16.mxu0 %v1804_v26  ;;  %v821_v22 = vcvt.s32.f32 %v817_v18  ;;  %v823_v23 = vcvt.s32.f32 %v819_v19  ;;  %v822_v24 = vcvt.s32.f32 %v818_v20  ;;  %v825_v25 = vmul.f32 0.0625, %v820_v21 }
  0x56   : > { %787 = vmatpush1.bf16.msra.mxu1 %v1809_v29  ;;  %v3081_v18 = vmov 0  ;;  %v3083_v19 = vmov 0  ;;  %v3085_v20 = vmov 0 }
  0x57   : > { %788 = vmatprep.subr.bf16.mxu1 %v1812_v31  ;;  %v826_v26 = vmul.f32 0.0625, %v821_v22  ;;  %v828_v27 = vmul.f32 0.0625, %v823_v23  ;;  %v829_v29 = vadd.f32 0.001, %v825_v25  ;;  %v3099_v25 = vmov 0 }
  0x58   : > { %746 = vmatpush1.bf16.msra.mxu0 %v1808_v28  ;;  %v827_v28 = vmul.f32 0.0625, %v822_v24 }
  0x59   : > { %747 = vmatprep.subr.bf16.mxu0 %v1810_v30  ;;  %v830_v30 = vadd.f32 0.001, %v826_v26  ;;  %v832_v31 = vadd.f32 0.001, %v828_v27  ;;  %v3101_v26 = vmov 0 }
  0x5a   : > { %789 = vmatpush1.bf16.msra.mxu1 %v1815_v33  ;;  %v833_v33 = vfloor.f32 %v829_v29  ;;  %v3110_v29 = vmov 0 }
  0x5b   : > { %790 = vmatprep.subr.bf16.mxu1 %v1818_v35  ;;  %v836_v35 = vfloor.f32 %v832_v31 }
  0x5c   : > { %748 = vmatpush1.bf16.msra.mxu0 %v1814_v32  ;;  %v831_v32 = vadd.f32 0.001, %v827_v28 }
  0x5d   : > { %749 = vmatprep.subr.bf16.mxu0 %v1816_v34  ;;  %v834_v34 = vfloor.f32 %v830_v30  ;;  %v3113_v30 = vmov 0 }
  0x5e   : > { %791 = vmatpush2.bf16.msra.mxu1 %v1821_v37  ;;  %v845_v37 = vmul.f32 0.0625, %v833_v33 }
  0x5f   : > { %792 = vmatprep.subr.bf16.mxu1 %v1824_v39  ;;  %v848_v39 = vmul.f32 0.0625, %v836_v35 }
  0x60   : > { %750 = vmatpush2.bf16.msra.mxu0 %v1820_v36  ;;  %v835_v36 = vfloor.f32 %v831_v32  ;;  %v3119_v32 = vmov 0 }
  0x61   : > { %751 = vmatprep.subr.bf16.mxu0 %v1822_v38  ;;  %v846_v38 = vmul.f32 0.0625, %v834_v34 }
  0x62   : > { %793 = vmatpush2.bf16.msra.mxu1 %v1827_v41  ;;  %v837_v41 = vmul.f32 16.0, %v833_v33 }
  0x63   : > { %794 = vmatprep.subr.bf16.mxu1 %v1830_v43  ;;  %v838_v43 = vmul.f32 16.0, %v834_v34 }
  0x64   : > { %752 = vmatpush2.bf16.msra.mxu0 %v1826_v40  ;;  %v847_v40 = vmul.f32 0.0625, %v835_v36 }
  0x65   : > { %753 = vmatprep.subr.bf16.mxu0 %v1828_v42  ;;  %v849_v42 = vadd.f32 0.001, %v845_v37 }
  0x66   : > { %795 = vmatpush2.bf16.msra.mxu1 %v1833_v45  ;;  %v840_v45 = vmul.f32 16.0, %v836_v35 }
  0x67   : > { %796 = vmatprep.subr.bf16.mxu1 %v1836_v47  ;;  %v851_v47 = vadd.f32 0.001, %v847_v40  ;;  %v3150_v40 = vmov 0 }
  0x68   : > { %754 = vmatpush2.bf16.msra.mxu0 %v1832_v44  ;;  %v850_v44 = vadd.f32 0.001, %v846_v38  ;;  %v3144_v38 = vmov 0 }
  0x69   : > { %755 = vmatprep.subr.bf16.mxu0 %v1834_v46  ;;  %v852_v46 = vadd.f32 0.001, %v848_v39  ;;  %v3147_v39 = vmov 0 }
  0x6a   : > { %797 = vmatpush2.bf16.msra.mxu1 %v1839_v49  ;;  %v853_v49 = vfloor.f32 %v849_v42  ;;  %v3158_v42 = vmov 0 }
  0x6b   : > { %798 = vmatprep.subr.bf16.mxu1 %v1842_v51  ;;  %v854_v51 = vfloor.f32 %v850_v44  ;;  %v3166_v44 = vmov 0 }
  0x6c   : > { %756 = vmatpush2.bf16.msra.mxu0 %v1838_v48  ;;  %v841_v48 = vsub.f32 %v820_v21, %v837_v41  ;;  %v3089_v21 = vmov 0  ;;  %v3154_v41 = vmov 0 }
  0x6d   : > { %757 = vmatprep.subr.bf16.mxu0 %v1840_v50  ;;  %v842_v50 = vsub.f32 %v821_v22, %v838_v43  ;;  %v3092_v22 = vmov 0  ;;  %v3161_v43 = vmov 0 }
  0x6e   : > { %799 = vmatpush2.bf16.msra.mxu1 %v1845_v53  ;;  %v844_v53 = vsub.f32 %v823_v23, %v840_v45  ;;  %vm984_vm0 = vcmp.ge.f32.partialorder %v841_v48, -1.0  ;;  %vm988_vm1 = vcmp.le.f32.partialorder %v841_v48, 14.0  ;;  %v3094_v23 = vmov 0 }
  0x6f   : > { %800 = vmatprep.subr.bf16.mxu1 %v1848_v55  ;;  %v855_v55 = vfloor.f32 %v851_v47  ;;  %vm985_vm2 = vcmp.ge.f32.partialorder %v842_v50, -1.0  ;;  %vm989_vm3 = vcmp.le.f32.partialorder %v842_v50, 14.0  ;;  %vm2202_vm6 = vmand %vm984_vm0, %vm988_vm1  ;;  %vm879_vm7 = vcmp.ge.f32.partialorder %v842_v50, 1.0 }
  0x70   : > { %758 = vmatpush2.bf16.msra.mxu0 %v1844_v52  ;;  %v839_v52 = vmul.f32 16.0, %v835_v36  ;;  %vm987_vm4 = vcmp.ge.f32.partialorder %v844_v53, -1.0  ;;  %vm991_vm5 = vcmp.le.f32.partialorder %v844_v53, 14.0  ;;  %vm883_vm8 = vcmp.le.f32.partialorder %v842_v50, 16.0  ;;  %vm2206_vm9 = vmand %vm985_vm2, %vm989_vm3 }
  0x71   : > { %759 = vmatprep.subr.bf16.mxu0 %v1846_v54  ;;  %v856_v54 = vfloor.f32 %v852_v46  ;;  %vm936_vm10 = vcmp.ge.f32.partialorder %v842_v50, 0.0  ;;  %vm940_vm11 = vcmp.le.f32.partialorder %v842_v50, 15.0  ;;  %vm2214_vm12 = vmand %vm987_vm4, %vm991_vm5  ;;  %vm881_vm0 = vcmp.ge.f32.partialorder %v844_v53, 1.0 }
  0x72   : > { %801 = vmatpush2.bf16.msra.mxu1 %v1851_v57  ;;  %v858_v57 = vmul.f32 16.0, %v854_v51  ;;  %vm2218_vm15 = vmand %vm879_vm7, %vm883_vm8  ;;  %vm885_vm1 = vcmp.le.f32.partialorder %v844_v53, 16.0  ;;  %vm938_vm5 = vcmp.ge.f32.partialorder %v844_v53, 0.0  ;;  %vm942_vm7 = vcmp.le.f32.partialorder %v844_v53, 15.0 }
  0x73   : > { %802 = vmatprep.subr.bf16.mxu1 %v1854_v59  ;;  %v860_v59 = vmul.f32 16.0, %v856_v54  ;;  %vm2226_vm2 = vmand %vm936_vm10, %vm940_vm11  ;;  %v3176_v51 = vmov 0  ;;  %v3219_v45 = vmov 0 }
  0x74   : > { %760 = vmatpush2.bf16.msra.mxu0 %v1850_v56  ;;  %v857_v56 = vmul.f32 16.0, %v853_v49 }
  0x75   : > { %761 = vmatprep.subr.bf16.mxu0 %v1852_v58  ;;  %v843_v58 = vsub.f32 %v822_v24, %v839_v52 }
  0x76   : > { %803 = vmatpush2.bf16.msra.mxu1 %v1857_v61  ;;  %v859_v61 = vmul.f32 16.0, %v855_v55 }
  0x77   : > { %804 = vmatprep.subr.bf16.mxu1 %v1860_v63  ;;  %v2210_v63 = vsub.f32 %v833_v33, %v857_v56  ;;  %vm986_vm13 = vcmp.ge.f32.partialorder %v843_v58, -1.0  ;;  %vm990_vm14 = vcmp.le.f32.partialorder %v843_v58, 14.0  ;;  %v3123_v33 = vmov 0 }
  0x78   : > { %762 = vmatpush2.bf16.msra.mxu0 %v1856_v60  ;;  %v3057_v60 = vmov 0  ;;  %vm2231_vm4 = vmand %vm986_vm13, %vm990_vm14  ;;  %vm878_vm13 = vcmp.ge.f32.partialorder %v841_v48, 1.0  ;;  %vm882_vm14 = vcmp.le.f32.partialorder %v841_v48, 16.0 }
  0x79   : > { %763 = vmatprep.subr.bf16.mxu0 %v1858_v62  ;;  %v3058_v60 = vsel %vm2202_vm6, 4294967295, %v3057_v60  ;;  %v3059_v62 = vmov 0  ;;  %vm3022_vm3 = vcmp.ge.f32.partialorder %v2210_v63, -1.0 }
  0x7a   : > { %805 = vmatpush2.bf16.msra.mxu1 %v1863_v2  ;;  %v3060_v62 = vsel %vm2206_vm9, 4294967295, %v3059_v62  ;;  %v3061_v2 = vmov 0  ;;  %vm2276_vm9 = vmand %vm878_vm13, %vm882_vm14 }
  0x7b   : > { %v3062_v2 = vsel %vm2214_vm12, 4294967295, %v3061_v2  ;;  %vm2236_vm12 = vmand %vm881_vm0, %vm885_vm1  ;;  %v3082_v18 = vsel %vm2276_vm9, 4294967295, %v3081_v18  ;;  %vm3088_vm14 = vnez %v3060_v62 }
  0x7c   : > { %764 = vmatpush2.bf16.msra.mxu0 %v1862_v1  ;;  %v2212_v1 = vsub.f32 %v834_v34, %v858_v57  ;;  %vm2261_vm1 = vmand %vm2202_vm6, %vm3022_vm3  ;;  %vm880_vm3 = vcmp.ge.f32.partialorder %v843_v58, 1.0  ;;  %v3127_v34 = vmov 0  ;;  %v3190_v57 = vmov 0 }
  0x7d   : > { %807 = vmatmul.mubr.bf16.vlgmr.msra.gmra.mxu1 %v1520_v3 }
  0x7e   : > { %1392 = vmatprep.mubr.bf16.mxu1 %v1897_v13  ;;  %vm3019_vm8 = vcmp.ge.f32.partialorder %v2212_v1, -1.0  ;;  %vm3087_vm13 = vcmp.ge.f32.partialorder %v2212_v1, -1.0 }
  0x7f   : > { %766 = vmatmul.mubr.bf16.vlgmr.msra.gmra.mxu0 %v1520_v3  ;;  %v3063_v3 = vmov 0  ;;  %vm2244_vm10 = vmand %vm2218_vm15, %vm3019_vm8 }
  0x80   : > { %1349 = vmatprep.mubr.bf16.mxu0 %v1897_v13  ;;  %v3064_v3 = vsel %vm2218_vm15, 4294967295, %v3063_v3  ;;  %vm2252_vm11 = vmand %vm2226_vm2, %vm3019_vm8  ;;  %v3073_v13 = vmov 0 }
  0x81   : > { %v3074_v13 = vsel %vm2252_vm11, 4294967295, %v3073_v13  ;;  %vm939_vm11 = vcmp.le.f32.partialorder %v841_v48, 15.0  ;;  %vm2298_vm6 = vmand %vm3088_vm14, %vm3087_vm13 }
  0x82   : > { %v3090_v21 = vsel %vm2298_vm6, 4294967295, %v3089_v21 }
 0x13d   : > { %v2180_v5 = vpop.f32.mrf.mxu1 }
 0x13f   : > { %v2178_v4 = vpop.f32.mrf.mxu0  ;;  %v2184_v7 = vpop.f32.mrf.mxu1 }
 0x140   : > { %v1701_v12 = vpack.i.bf16 %v2184_v7, %v2180_v5 }
 0x141   : > { %v2182_v6 = vpop.f32.mrf.mxu0  ;;  %v812_v10 = vpop.f32.mrf.mxu1 }
 0x142   : > { %v1696_v8 = vpack.i.bf16 %v2182_v6, %v2178_v4  ;;  %v3065_v10 = vmov 0 }
 0x143   : > { %v771_v9 = vpop.f32.mrf.mxu0  ;;  %v813_v11 = vpop.f32.mrf.mxu1  ;;  %v3066_v10 = vsel %vm2226_vm2, 4294967295, %v3065_v10  ;;  %vm935_vm2 = vcmp.ge.f32.partialorder %v841_v48, 0.0 }
 0x144   : > { %1697 = vrot.lane.b32.xlu1 %v1696_v8, %s1891_s10  ;;  %1687 = vrot.lane.b32.xlu0 %v1696_v8, %s1892_s11  ;;  %v2224_v9 = vsub.f32 %v835_v36, %v859_v61  ;;  %v3069_v11 = vmov 0  ;;  %v3134_v36 = vmov 0 }
 0x145   : > { %v772_v0 = vpop.f32.mrf.mxu0  ;;  %v3070_v11 = vsel %vm2236_vm12, 4294967295, %v3069_v11 }
 0x146   : > { %v3067_v0 = vmov 0  ;;  %vm3027_vm15 = vcmp.ge.f32.partialorder %v2224_v9, -1.0 }
 0x147   : > { %v3068_v0 = vsel %vm2231_vm4, 4294967295, %v3067_v0 }
 0x148   : > { %1702 = vrot.lane.b32.xlu1 %v1701_v12, %s1891_s10  ;;  %1692 = vrot.lane.b32.xlu0 %v1701_v12, %s1892_s11 }
 0x14c   : > { %1712 = vrot.lane.b32.xlu1 %v1701_v12, %s1893_s12  ;;  %1707 = vrot.lane.b32.xlu0 %v1696_v8, %s1893_s12 }
 0x150   : > { %1722 = vrot.lane.b32.xlu1 %v1701_v12, %s1894_s13  ;;  %1717 = vrot.lane.b32.xlu0 %v1696_v8, %s1894_s13 }
 0x154   : > { %1732 = vrot.lane.b32.xlu1 %v1701_v12, %s1895_s14  ;;  %1727 = vrot.lane.b32.xlu0 %v1696_v8, %s1895_s14 }
 0x158   : > { %1742 = vrot.lane.b32.xlu1 %v1701_v12, %s1896_s20  ;;  %1737 = vrot.lane.b32.xlu0 %v1696_v8, %s1896_s20 }
 0x15c   : > { %1752 = vrot.lane.b32.xlu1 %v1701_v12, %s1898_s21  ;;  %1747 = vrot.lane.b32.xlu0 %v1696_v8, %s1898_s21 }
 0x160   : > { %1762 = vrot.lane.b32.xlu1 %v1701_v12, %s1899_s24  ;;  %1757 = vrot.lane.b32.xlu0 %v1696_v8, %s1899_s24  ;;  %v2222_v8 = vsub.f32 %v836_v35, %v860_v59  ;;  %v3071_v12 = vmov 0  ;;  %v3131_v35 = vmov 0  ;;  %v3196_v59 = vmov 0 }
 0x161   : > { %v3072_v12 = vsel %vm2244_vm10, 4294967295, %v3071_v12  ;;  %vm2266_vm10 = vmand %vm938_vm5, %vm942_vm7 }
 0x162   : > { %vm1122_vm0 = vcmp.ge.f32.partialorder %v2222_v8, -1.0  ;;  %vm2284_vm5 = vmand %vm2231_vm4, %vm3027_vm15  ;;  %vm3091_vm15 = vnez %v3062_v2 }
 0x163   : > { %vm2272_vm8 = vmand %vm2236_vm12, %vm1122_vm0  ;;  %v3084_v19 = vsel %vm2284_vm5, 4294967295, %v3083_v19  ;;  %vm884_vm12 = vcmp.le.f32.partialorder %v843_v58, 16.0  ;;  %vm937_vm5 = vcmp.ge.f32.partialorder %v843_v58, 0.0 }
 0x164   : > { %1287 = vperm.xlu0 %1766, %v1283_v14   ;;  %1292 = vperm.xlu1 %1767, %v1284_v15   ;;  %v3077_v15 = vmov 0  ;;  %v3080_v16 = vsel %vm2272_vm8, 4294967295, %v3079_v16  ;;  %vm2290_vm7 = vmand %vm2266_vm10, %vm1122_vm0  ;;  %vm3096_vm8 = vcmp.ge.f32.partialorder %v2210_v63, -1.0 }
 0x165   : > { %v3078_v15 = vsel %vm2266_vm10, 4294967295, %v3077_v15  ;;  %v3086_v20 = vsel %vm2290_vm7, 4294967295, %v3085_v20  ;;  %vm2304_vm4 = vmand %vm3091_vm15, %vm1122_vm0  ;;  %vm941_vm7 = vcmp.le.f32.partialorder %v843_v58, 15.0  ;;  %v3193_v58 = vmov 0 }
 0x166   : > { %v3093_v22 = vsel %vm2304_vm4, 4294967295, %v3092_v22  ;;  %vm2308_vm10 = vmand %vm935_vm2, %vm939_vm11 }
 0x167   : > { %v3095_v23 = vsel %vm2308_vm10, 4294967295, %v3094_v23  ;;  %vm2316_vm13 = vmand %vm2276_vm9, %vm3096_vm8 }
 0x168   : > { %vm2320_vm6 = vmand %vm880_vm3, %vm884_vm12  ;;  %vm3036_vm12 = vcmp.le.f32.partialorder %v2212_v1, 14.0  ;;  %vm3106_vm3 = vcmp.ge.f32.partialorder %v2224_v9, -1.0 }
 0x169   : > { %v3100_v25 = vsel %vm2320_vm6, 4294967295, %v3099_v25  ;;  %vm2324_vm0 = vmand %vm937_vm5, %vm941_vm7  ;;  %vm3115_vm7 = vcmp.ge.f32.partialorder %v2224_v9, -1.0 }
 0x16a   : > { %v3102_v26 = vsel %vm2324_vm0, 4294967295, %v3101_v26  ;;  %vm3103_vm11 = vmmov %vm3096_vm8  ;;  %vm3112_vm8 = vnez %v3074_v13  ;;  %v3207_v13 = vmov 0 }
 0x16b   : > { %vm2333_vm4 = vmand %vm2308_vm10, %vm3103_vm11  ;;  %vm3109_vm11 = vnez %v3072_v12 }
 0x16c   : > { %vm2343_vm5 = vmand %vm2320_vm6, %vm3106_vm3  ;;  %vm3118_vm6 = vcmp.le.f32.partialorder %v2210_v63, 14.0 }
 0x16d   : > { %vm2353_vm10 = vmand %vm3109_vm11, %vm3036_vm12 }
 0x16e   : > { %v3111_v29 = vsel %vm2353_vm10, 4294967295, %v3110_v29  ;;  %vm2361_vm3 = vmand %vm3112_vm8, %vm3036_vm12  ;;  %vm3121_vm12 = vcmp.le.f32.partialorder %v2222_v8, 14.0 }
 0x16f   : > { %v3114_v30 = vsel %vm2361_vm3, 4294967295, %v3113_v30  ;;  %vm2369_vm2 = vmand %vm2324_vm0, %vm3115_vm7  ;;  %vm3122_vm3 = vnez %v3080_v16  ;;  %vm3126_vm0 = vnez %v3086_v20 }
 0x170   : > { %vm2378_vm9 = vmand %vm2261_vm1, %vm3118_vm6  ;;  %vm3129_vm1 = vcmp.ge.f32.partialorder %v2212_v1, 0.0 }
 0x171   : > { %v3120_v32 = vsel %vm2378_vm9, 4294967295, %v3119_v32  ;;  %vm2387_vm7 = vmand %vm3122_vm3, %vm3121_vm12 }
 0x172   : > { %v3124_v33 = vsel %vm2387_vm7, 4294967295, %v3123_v33  ;;  %vm3125_vm11 = vmmov %vm3121_vm12  ;;  %vm3138_vm7 = vnez %v3058_v60 }
 0x173   : > { %vm2395_vm10 = vmand %vm3126_vm0, %vm3125_vm11 }
 0x174   : > { %v3128_v34 = vsel %vm2395_vm10, 4294967295, %v3127_v34  ;;  %vm1083_vm8 = vmand %vm3088_vm14, %vm3129_vm1  ;;  %vm3136_vm1 = vcmp.ge.f32.partialorder %v2222_v8, 0.0 }
 0x175   : > { %vm3130_vm12 = vmmov %vm3118_vm6 }
 0x176   : > { %vm2408_vm3 = vmand %vm2316_vm13, %vm3130_vm12  ;;  %vm3152_vm13 = vcmp.le.f32.partialorder %v2212_v1, 14.0 }
 0x177   : > { %v3132_v35 = vsel %vm2408_vm3, 4294967295, %v3131_v35  ;;  %vm3133_vm0 = vmmov %vm3118_vm6  ;;  %vm3137_vm3 = vcmp.ge.f32.partialorder %v2210_v63, 0.0  ;;  %vm3140_vm6 = vnez %v3084_v19 }
 0x178   : > { %vm2416_vm11 = vmand %vm2333_vm4, %vm3133_vm0  ;;  %vm3139_vm0 = vcmp.le.f32.partialorder %v2224_v9, 14.0 }
 0x179   : > { %v3135_v36 = vsel %vm2416_vm11, 4294967295, %v3134_v36  ;;  %vm1085_vm10 = vmand %vm3091_vm15, %vm3136_vm1 }
 0x17a   : > { %vm1082_vm9 = vmand %vm3138_vm7, %vm3137_vm3 }
 0x17b   : > { %vm2436_vm11 = vmand %vm3140_vm6, %vm3139_vm0  ;;  %vm3149_vm6 = vcmp.le.f32.partialorder %v2212_v1, 15.0 }
 0x17c   : > { %vm3143_vm1 = vmmov %vm3139_vm0 }
 0x17d   : > { %vm2444_vm12 = vmand %vm2343_vm5, %vm3143_vm1  ;;  %vm3153_vm5 = vnez %v3090_v21 }
 0x17e   : > { %v3145_v38 = vsel %vm2444_vm12, 4294967295, %v3144_v38  ;;  %vm3146_vm3 = vmmov %vm3139_vm0  ;;  %vm3156_vm12 = vcmp.le.f32.partialorder %v2222_v8, 14.0 }
 0x17f   : > { %vm2452_vm4 = vmand %vm2369_vm2, %vm3146_vm3  ;;  %vm3157_vm2 = vnez %v3093_v22 }
 0x180   : > { %v3148_v39 = vsel %vm2452_vm4, 4294967295, %v3147_v39  ;;  %vm2458_vm0 = vmand %vm1083_vm8, %vm3149_vm6  ;;  %vm3160_vm8 = vcmp.le.f32.partialorder %v2222_v8, 15.0  ;;  %vm3171_vm4 = vcmp.ge.f32.partialorder %v2212_v1, 0.0 }
 0x181   : > { %v3151_v40 = vsel %vm2458_vm0, 4294967295, %v3150_v40  ;;  %vm2466_vm1 = vmand %vm3153_vm5, %vm3152_vm13  ;;  %vm3163_vm13 = vcmp.ge.f32.partialorder %v2224_v9, 0.0  ;;  %vm3164_vm5 = vnez %v3068_v0  ;;  %vm3180_vm0 = vnez %v3070_v11 }
 0x182   : > { %v3155_v41 = vsel %vm2466_vm1, 4294967295, %v3154_v41  ;;  %vm2474_vm3 = vmand %vm3157_vm2, %vm3156_vm12  ;;  %vm3165_vm12 = vcmp.le.f32.partialorder %v2210_v63, 15.0 }
 0x183   : > { %v3159_v42 = vsel %vm2474_vm3, 4294967295, %v3158_v42  ;;  %vm2480_vm6 = vmand %vm1085_vm10, %vm3160_vm8  ;;  %vm3168_vm10 = vcmp.ge.f32.partialorder %v2212_v1, 1.0 }
 0x184   : > { %v3162_v43 = vsel %vm2480_vm6, 4294967295, %v3161_v43  ;;  %vm1084_vm1 = vmand %vm3164_vm5, %vm3163_vm13  ;;  %vm3178_vm6 = vcmp.ge.f32.partialorder %v2222_v8, 1.0 }
 0x185   : > { %vm2492_vm2 = vmand %vm1082_vm9, %vm3165_vm12  ;;  %vm3172_vm9 = vnez %v3064_v3 }
 0x186   : > { %v3167_v44 = vsel %vm2492_vm2, 4294967295, %v3166_v44  ;;  %vm2500_vm8 = vmand %vm3088_vm14, %vm3168_vm10  ;;  %vm3175_vm14 = vcmp.le.f32.partialorder %v2224_v9, 15.0  ;;  %vm3184_vm2 = vcmp.ge.f32.partialorder %v2210_v63, 1.0 }
 0x187   : > { %vm2511_vm12 = vmand %vm3172_vm9, %vm3171_vm4  ;;  %vm3179_vm9 = vcmp.ge.f32.partialorder %v2222_v8, 0.0 }
 0x188   : > { %vm2518_vm10 = vmand %vm1084_vm1, %vm3175_vm14  ;;  %vm3183_vm1 = vcmp.lt.s32.totalorder %v2196_v17, 111  ;;  %vm3200_vm14 = vnez %v3128_v34 }
 0x189   : > { %v3177_v51 = vsel %vm2518_vm10, 4294967295, %v3176_v51  ;;  %vm999_vm4 = vmand %vm3091_vm15, %vm3178_vm6  ;;  %vm3195_vm6 = vcmp.le.f32.partialorder %v2222_v8, 16.0 }
 0x18a   : > { %vm2532_vm3 = vmand %vm3180_vm0, %vm3179_vm9  ;;  %vm3187_vm9 = vnez %v3111_v29  ;;  %vm3189_vm0 = vcmp.le.f32.partialorder %v2212_v1, 16.0 }
 0x18b   : > { %vm2543_vm13 = vmand %vm3138_vm7, %vm3184_vm2  ;;  %vm3192_vm2 = vcmp.le.f32.partialorder %v2212_v1, 15.0 }
 0x18c   : > { %vm2559_vm7 = vmand %vm2500_vm8, %vm3189_vm0  ;;  %vm3198_vm0 = vnez %v3120_v32  ;;  %vm3206_vm8 = vcmp.le.f32.partialorder %v2210_v63, 16.0 }
 0x18d   : > { %v3191_v57 = vsel %vm2559_vm7, 4294967295, %v3190_v57  ;;  %vm2567_vm15 = vmand %vm2511_vm12, %vm3192_vm2  ;;  %vm3201_vm12 = vcmp.le.f32.partialorder %v2222_v8, 15.0  ;;  %vm3210_vm7 = vcmp.ge.f32.partialorder %v2210_v63, 0.0 }
 0x18e   : > { %v3194_v58 = vsel %vm2567_vm15, 4294967295, %v3193_v58  ;;  %vm2573_vm10 = vmand %vm999_vm4, %vm3195_vm6  ;;  %vm3211_vm6 = vnez %v3082_v18 }
 0x18f   : > { %v3197_v59 = vsel %vm2573_vm10, 4294967295, %v3196_v59  ;;  %vm2587_vm2 = vmand %vm2532_vm3, %vm3201_vm12  ;;  %vm3218_vm10 = vnez %v3151_v40 }
 0x190   : > { %vm2602_vm3 = vmand %vm2543_vm13, %vm3206_vm8 }
 0x191   : > { %v3208_v13 = vsel %vm2602_vm3, 4294967295, %v3207_v13  ;;  %vm2616_vm4 = vmand %vm3211_vm6, %vm3210_vm7  ;;  %vm3049_vm6 = vmmov 1   ;;  %vm3225_vm7 = vnez %v3159_v42 }
 0x192   : > { %vm2633_vm15 = vmpackc.low %vm3218_vm10, %vm3049_vm6  ;;  %vm3226_vm10 = vnez %v3162_v43  ;;  %v3234_v43 = vmov 0 }
 0x193   : > { %v3220_v45 = vsel %vm2633_vm15, 4294967295, %v3219_v45  ;;  %vm2652_vm15 = vmpackc.low %vm3226_vm10, %vm3049_vm6  ;;  %vm3236_vm10 = vcmp.le.f32.partialorder %v2210_v63, 15.0 }
 0x1b6   : > { %v2504_v46 = vpop.permute.xlu1 %1697  ;;  %v1688_v47 = vpop.permute.xlu0 %1687 }
 0x1b7   : > { %v1690_v49 = vunpack.i.h.bf16 %v1688_v47  ;;  %v1689_v50 = vunpack.i.l.bf16 %v1688_v47  ;;  %v1700_v12 = vunpack.i.h.bf16 %v2504_v46  ;;  %v1699_v14 = vunpack.i.l.bf16 %v2504_v46 }
 0x1b9   : > { %v1199_v53 = vsel %vm3183_vm1, %v1689_v50, %v1690_v49  ;;  %vm3188_vm1 = vnez %v3114_v30 }
 0x1ba   : > { %v2548_v55 = vpop.permute.xlu1 %1702  ;;  %v1693_v56 = vpop.permute.xlu0 %1692  ;;  %v1217_v62 = vsel %vm3198_vm0, %v1199_v53, 0.0  ;;  %vm3209_vm0 = vcmp.lt.s32.totalorder %v2196_v17, 111  ;;  %v3237_v53 = vmov 0 }
 0x1bb   : > { %v1695_v60 = vunpack.i.h.bf16 %v1693_v56  ;;  %v1694_v61 = vunpack.i.l.bf16 %v1693_v56  ;;  %v1705_v16 = vunpack.i.h.bf16 %v2548_v55  ;;  %v1704_v19 = vunpack.i.l.bf16 %v2548_v55  ;;  %vm3214_vm13 = vmmov %vm3209_vm0 }
 0x1bc   : > { %vm3215_vm8 = vmmov %vm3209_vm0  ;;  %v1279_v31 = vpack.c.bf16 %v1217_v62, %v1217_v62 }
 0x1bd   : > { %v1197_v20 = vsel %vm3209_vm0, %v1694_v61, %v1695_v60  ;;  %v1198_v22 = vsel %vm3214_vm13, %v1690_v49, %v1694_v61  ;;  %v1200_v24 = vsel %vm3215_vm8, %v1695_v60, %v1689_v50  ;;  %vm3221_vm13 = vcmp.ge.f32.partialorder %v2224_v9, 1.0 }
 0x1be   : > { %v1713_v27 = vpop.permute.xlu1 %1712  ;;  %v1708_v28 = vpop.permute.xlu0 %1707  ;;  %v1219_v32 = vsel %vm2436_vm11, %v1197_v20, 0.0  ;;  %vm2641_vm8 = vmand %vm3164_vm5, %vm3221_vm13  ;;  %vm3224_vm11 = vnez %v3155_v41  ;;  %v1220_v47 = vsel %vm3225_vm7, %v1200_v24, 0.0  ;;  %v3227_v49 = vmov 0 }
 0x1bf   : > { %v1218_v46 = vsel %vm3224_vm11, %v1198_v22, 0.0  ;;  %v1715_v48 = vunpack.i.h.bf16 %v1713_v27  ;;  %v1714_v40 = vunpack.i.l.bf16 %v1713_v27  ;;  %v3228_v49 = vsel %vm2652_vm15, 4294967295, %v3227_v49  ;;  %vm2675_vm15 = vmand %vm2616_vm4, %vm3236_vm10 }
 0x1c0   : > { %vm3229_vm5 = vcmp.ge.f32.partialorder %v2224_v9, 0.0  ;;  %vm3230_vm13 = vnez %v3100_v25  ;;  %v1710_v41 = vunpack.i.h.bf16 %v1708_v28  ;;  %v1709_v42 = vunpack.i.l.bf16 %v1708_v28 }
 0x1c1   : > { %vm2660_vm0 = vmand %vm3230_vm13, %vm3229_vm5  ;;  %v1280_v50 = vpack.c.bf16 %v1218_v46, %v1218_v46  ;;  %v1282_v52 = vpack.c.bf16 %v1220_v47, %v1220_v47  ;;  %vm3233_vm7 = vnez %v3167_v44  ;;  %v3238_v53 = vsel %vm2675_vm15, 4294967295, %v3237_v53 }
 0x1c2   : > { %vm2667_vm11 = vmpackc.low %vm3233_vm7, %vm3049_vm6  ;;  %vm3239_vm5 = vcmp.lt.s32.totalorder %v2196_v17, 113  ;;  %v1281_v56 = vpack.c.bf16 %v1219_v32, %v1219_v32  ;;  %vm3242_vm7 = vcmp.le.f32.partialorder %v2224_v9, 16.0  ;;  %v3243_v60 = vmov 0  ;;  %v1718_v20 = vpop.permute.xlu0 %1717 }
 0x1c3   : > { %v3235_v43 = vsel %vm2667_vm11, 4294967295, %v3234_v43  ;;  %v1117_v54 = vsel %vm3239_vm5, %v1699_v14, %v1700_v12  ;;  %vm3240_vm13 = vmmov %vm3239_vm5  ;;  %vm3245_vm4 = vcmp.lt.s32.totalorder %v2196_v17, 112  ;;  %vm3250_vm11 = vmmov 1  }
 0x1c4   : > { %v1116_v55 = vsel %vm3240_vm13, %v1700_v12, %v1704_v19  ;;  %vm3241_vm12 = vmmov %vm3239_vm5  ;;  %v1161_v61 = vsel %vm3245_vm4, %v1710_v41, %v1714_v40  ;;  %vm3248_vm5 = vcmask 1043456   ;;  %v3252_v22 = vmov 0 }
 0x1c5   : > { %v1118_v44 = vsel %vm3241_vm12, %v1705_v16, %v1699_v14  ;;  %vm2689_vm6 = vmand %vm2641_vm8, %vm3242_vm7  ;;  %1587 = vmatprep.subr.msk.bf16.mxu0 %vm3248_vm5, %v1280_v50  ;;  %v1723_v14 = vpop.permute.xlu1 %1722  ;;  %vm3251_vm8 = vnez %v3177_v51  ;;  %v3255_v24 = vmov 0  ;;  %v1605_v28 = vpack.c.bf16 %v1161_v61, %v1116_v55  ;;  %1589 = vmatprep.subr.msk.bf16.mxu1 %vm3248_vm5, %v1282_v52 }
 0x1c6   : > { %v3244_v60 = vsel %vm2689_vm6, 4294967295, %v3243_v60  ;;  %vm3246_vm10 = vmmov %vm3245_vm4  ;;  %v1725_v51 = vunpack.i.h.bf16 %v1723_v14  ;;  %v1724_v37 = vunpack.i.l.bf16 %v1723_v14  ;;  %v1720_v46 = vunpack.i.h.bf16 %v1718_v20 }
 0x1c7   : > { %v1162_v62 = vsel %vm3246_vm10, %v1709_v42, %v1710_v41  ;;  %vm3247_vm13 = vmmov %vm3245_vm4  ;;  %vm3254_vm4 = vcmp.le.f32.partialorder %v2224_v9, 15.0  ;;  %v1719_v47 = vunpack.i.l.bf16 %v1718_v20  ;;  %v3286_v52 = vmov 0 }
 0x1c8   : > { %v1163_v12 = vsel %vm3247_vm13, %v1715_v48, %v1709_v42  ;;  %vm3249_vm12 = vmmov %vm3248_vm5  ;;  %v1160_v27 = vsel %vm3247_vm13, %v1714_v40, %v1715_v48  ;;  %vm3263_vm13 = vnez %v3066_v10  ;;  %v3264_v48 = vmov 0  ;;  %v1728_v42 = vpop.permute.xlu0 %1727 }
 0x1c9   : > { %v1306_v21 = vsel %vm3249_vm12, %v1279_v31, 0  ;;  %vm2704_vm7 = vmpackc.low %vm3251_vm8, %vm3250_vm11  ;;  %v1629_v31 = vpack.c.bf16 %v1163_v12, %v1118_v44  ;;  %vm3257_vm11 = vcmp.ge.f32.partialorder %v2212_v1, 1.0  ;;  %vm3258_vm12 = vnez %v3064_v3  ;;  %v1733_v41 = vpop.permute.xlu1 %1732 }
 0x1ca   : > { %v3253_v22 = vsel %vm2704_vm7, 4294967295, %v3252_v22  ;;  %vm2712_vm10 = vmand %vm2660_vm0, %vm3254_vm4  ;;  %1324 = vmatpush1.bf16.msra.mxu0 %v1306_v21  ;;  %v1608_v40 = vpack.c.bf16 %v1162_v62, %v1117_v54  ;;  %v1729_v54 = vunpack.i.l.bf16 %v1728_v42  ;;  %v3314_v62 = vmov 0 }
 0x1cb   : > { %v3256_v24 = vsel %vm2712_vm10, 4294967295, %v3255_v24  ;;  %vm2723_vm8 = vmand %vm3258_vm12, %vm3257_vm11  ;;  %vm3267_vm12 = vnez %v3191_v57  ;;  %vm3269_vm10 = vnez %v3197_v59 }
 0x1cc   : > { %vm3261_vm0 = vmmov %vm3248_vm5 }
 0x1cd   : > { %v1312_v0 = vsel %vm3261_vm0, %v1281_v56, 0  ;;  %vm3262_vm4 = vmmov %vm3257_vm11  ;;  %vm3268_vm0 = vnez %v3194_v58 }
 0x1ce   : > { %vm2732_vm5 = vmand %vm3263_vm13, %vm3262_vm4  ;;  %1367 = vmatpush1.bf16.msra.mxu1 %v1312_v0  ;;  %vm3270_vm13 = vcmp.lt.s32.totalorder %v2196_v17, 113 }
 0x1cf   : > { %v3265_v48 = vsel %vm2732_vm5, 4294967295, %v3264_v48  ;;  %vm3266_vm11 = vmpackc.low %vm3188_vm1, %vm3187_vm9  ;;  %v1115_v3 = vsel %vm3270_vm13, %v1704_v19, %v1705_v16  ;;  %vm3271_vm5 = vcmp.lt.s32.totalorder %v2196_v17, 127  ;;  %vm3274_vm1 = vnez %v3124_v33 }
 0x1d0   : > { %1606 = vmatprep.subr.msk.bf16.mxu0 %vm3266_vm11, %v1605_v28  ;;  %v1079_v10 = vsel %vm3271_vm5, %v1720_v46, %v1724_v37  ;;  %vm3272_vm6 = vmmov %vm3271_vm5  ;;  %v3277_v16 = vmov 0  ;;  %v1632_v34 = vpack.c.bf16 %v1160_v27, %v1115_v3  ;;  %vm3285_vm7 = vnez %v3265_v48 }
 0x1d1   : > { %v1080_v29 = vsel %vm3272_vm6, %v1719_v47, %v1720_v46  ;;  %vm3273_vm9 = vmmov %vm3271_vm5  ;;  %vm3276_vm5 = vcmp.le.f32.partialorder %v2212_v1, 16.0  ;;  %v1611_v19 = vpack.c.bf16 %v1079_v10, %v2182_v6  ;;  %v1735_v6 = vunpack.i.h.bf16 %v1733_v41 }
 0x1d2   : > { %v1081_v30 = vsel %vm3273_vm9, %v1725_v51, %v1719_v47  ;;  %vm3275_vm11 = vmpackc.low %vm3200_vm14, %vm3274_vm1  ;;  %v1078_v33 = vsel %vm3273_vm9, %v1724_v37, %v1725_v51  ;;  %vm3279_vm14 = vnez %v3135_v36  ;;  %vm3280_vm1 = vnez %v3132_v35 }
 0x1d3   : > { %1630 = vmatprep.subr.msk.bf16.mxu1 %vm3275_vm11, %v1629_v31  ;;  %vm2770_vm6 = vmand %vm2723_vm8, %vm3276_vm5  ;;  %v1635_v50 = vpack.c.bf16 %v1081_v30, %v2184_v7  ;;  %v1734_v7 = vunpack.i.l.bf16 %v1733_v41  ;;  %v1730_v36 = vunpack.i.h.bf16 %v1728_v42  ;;  %v1614_v1 = vpack.c.bf16 %v1080_v29, %v2178_v4 }
 0x1d4   : > { %v3278_v16 = vsel %vm2770_vm6, 4294967295, %v3277_v16  ;;  %vm3281_vm11 = vmpackc.low %vm3279_vm14, %vm3280_vm1  ;;  %vm3288_vm14 = vcmp.ge.f32.partialorder %v2222_v8, 1.0  ;;  %vm3289_vm1 = vnez %v3070_v11  ;;  %vm3295_vm8 = vnez %v3220_v45 }
 0x1d5   : > { %1609 = vmatpush1.bf16.msk.msra.mxu0 %vm3281_vm11, %v1608_v40  ;;  %vm3284_vm4 = vmmov %vm3276_vm5  ;;  %v1638_v4 = vpack.c.bf16 %v1078_v33, %v2180_v5  ;;  %vm3300_vm5 = vnez %v3228_v49 }
 0x1d6   : > { %vm2791_vm9 = vmand %vm3285_vm7, %vm3284_vm4  ;;  %vm3292_vm7 = vnez %v3148_v39  ;;  %vm3293_vm4 = vnez %v3145_v38  ;;  %1612 = vmatprep.subr.msk.bf16.mxu0 %vm3295_vm8, %v1611_v19  ;;  %v1743_v38 = vpop.permute.xlu1 %1742  ;;  %v1738_v39 = vpop.permute.xlu0 %1737  ;;  %vm3302_vm8 = vnez %v3082_v18 }
 0x1d7   : > { %v3287_v52 = vsel %vm2791_vm9, 4294967295, %v3286_v52  ;;  %vm2799_vm11 = vmand %vm3289_vm1, %vm3288_vm14  ;;  %v1744_v55 = vunpack.i.l.bf16 %v1743_v38  ;;  %v1740_v44 = vunpack.i.h.bf16 %v1738_v39  ;;  %v1739_v56 = vunpack.i.l.bf16 %v1738_v39 }
 0x1d8   : > { %vm3294_vm13 = vmpackc.low %vm3292_vm7, %vm3293_vm4  ;;  %vm3334_vm9 = vnez %v3238_v53 }
 0x1d9   : > { %1633 = vmatpush1.bf16.msk.msra.mxu1 %vm3294_vm13, %v1632_v34  ;;  %vm3296_vm3 = vmmov %vm3288_vm14  ;;  %vm3297_vm14 = vnez %v3078_v15  ;;  %vm3301_vm13 = vcmp.ge.f32.partialorder %v2210_v63, 1.0  ;;  %v1745_v15 = vunpack.i.h.bf16 %v1743_v38 }
 0x1da   : > { %vm2816_vm1 = vmand %vm3297_vm14, %vm3296_vm3  ;;  %1636 = vmatprep.subr.msk.bf16.mxu1 %vm3300_vm5, %v1635_v50  ;;  %vm3305_vm3 = vnez %v3235_v43  ;;  %vm3306_vm5 = vcmp.le.f32.partialorder %v2222_v8, 16.0  ;;  %vm3309_vm14 = vcmp.lt.s32.totalorder %v2196_v17, 15  ;;  %v3322_v8 = vmov 0  ;;  %v1753_v32 = vpop.permute.xlu1 %1752 }
 0x1db   : > { %vm2828_vm7 = vmand %vm3302_vm8, %vm3301_vm13  ;;  %1615 = vmatpush1.bf16.msk.msra.mxu0 %vm3305_vm3, %v1614_v1  ;;  %v980_v18 = vsel %vm3309_vm14, %v1734_v7, %v1735_v6  ;;  %v1755_v46 = vunpack.i.h.bf16 %v1753_v32  ;;  %v1754_v47 = vunpack.i.l.bf16 %v1753_v32 }
 0x1dc   : > { %vm2838_vm4 = vmand %vm2799_vm11, %vm3306_vm5 }
 0x1dd   : > { %vm3310_vm13 = vmmov %vm3309_vm14 }
 0x1de   : > { %v981_v49 = vsel %vm3310_vm13, %v1730_v36, %v1734_v7  ;;  %vm3311_vm8 = vmmov %vm3310_vm13 }
 0x1df   : > { %v982_v61 = vsel %vm3311_vm8, %v1729_v54, %v1730_v36  ;;  %vm3312_vm15 = vmmov %vm3311_vm8 }
 0x1e0   : > { %v983_v43 = vsel %vm3312_vm15, %v1735_v6, %v1729_v54  ;;  %vm3313_vm3 = vmmov %vm3306_vm5  ;;  %vm3316_vm5 = vcmp.lt.s32.totalorder %v2196_v17, 1  ;;  %vm3320_vm15 = vnez %v3253_v22  ;;  %v1748_v22 = vpop.permute.xlu0 %1747 }
 0x1e1   : > { %vm2854_vm11 = vmand %vm2816_vm1, %vm3313_vm3  ;;  %v1029_v12 = vsel %vm3316_vm5, %v1744_v55, %v1745_v15  ;;  %1639 = vmatpush1.bf16.msk.msra.mxu1 %vm3320_vm15, %v1638_v4  ;;  %vm3321_vm3 = vcmp.le.f32.partialorder %v2210_v63, 16.0  ;;  %vm3326_vm15 = vcmp.ge.f32.partialorder %v2224_v9, 1.0  ;;  %vm3327_vm1 = vnez %v3100_v25  ;;  %v1763_v25 = vpop.permute.xlu1 %1762 }
 0x1e2   : > { %v3315_v62 = vsel %vm2854_vm11, 4294967295, %v3314_v62  ;;  %vm3317_vm14 = vmmov %vm3316_vm5  ;;  %v1641_v27 = vpack.c.bf16 %v1029_v12, %v980_v18  ;;  %v1750_v0 = vunpack.i.h.bf16 %v1748_v22  ;;  %v1749_v48 = vunpack.i.l.bf16 %v1748_v22 }
 0x1e3   : > { %v1030_v14 = vsel %vm3317_vm14, %v1740_v44, %v1744_v55  ;;  %vm3318_vm13 = vmmov %vm3316_vm5  ;;  %vm3324_vm14 = vcmp.ge.f32.partialorder %v2210_v63, 1.0  ;;  %v1765_v57 = vunpack.i.h.bf16 %v1763_v25  ;;  %v1764_v58 = vunpack.i.l.bf16 %v1763_v25 }
 0x1e4   : > { %v1031_v20 = vsel %vm3318_vm13, %v1739_v56, %v1740_v44  ;;  %vm3319_vm8 = vmmov %vm3316_vm5  ;;  %v1644_v51 = vpack.c.bf16 %v1030_v14, %v981_v49  ;;  %vm3325_vm13 = vnez %v3095_v23 }
 0x1e5   : > { %v1032_v21 = vsel %vm3319_vm8, %v1745_v15, %v1739_v56  ;;  %vm2876_vm5 = vmand %vm2828_vm7, %vm3321_vm3  ;;  %v1617_v28 = vpack.c.bf16 %v1031_v20, %v982_v61 }
 0x1e6   : > { %v3323_v8 = vsel %vm2876_vm5, 4294967295, %v3322_v8  ;;  %v1620_v31 = vpack.c.bf16 %v1032_v21, %v983_v43  ;;  %vm947_vm8 = vmand %vm3325_vm13, %vm3324_vm14  ;;  %vm3333_vm14 = vnez %v3102_v26  ;;  %vm3335_vm5 = vnez %v3208_v13  ;;  %v1758_v26 = vpop.permute.xlu0 %1757 }
 0x1e7   : > { %vm2888_vm6 = vmand %vm3327_vm1, %vm3326_vm15  ;;  %v1760_v59 = vunpack.i.h.bf16 %v1758_v26  ;;  %v1759_v2 = vunpack.i.l.bf16 %v1758_v26 }
 0x1e8   : > { %vm3330_vm7 = vmpackc.low %vm3268_vm0, %vm3267_vm12  ;;  %vm3337_vm12 = vcmp.le.f32.partialorder %v2210_v63, 16.0 }
 0x1e9   : > { %1618 = vmatprep.subr.msk.bf16.mxu0 %vm3330_vm7, %v1617_v28  ;;  %vm3331_vm3 = vmpackc.low %vm2587_vm2, %vm3269_vm10  ;;  %vm3340_vm2 = vnez %v3256_v24  ;;  %vm3341_vm10 = vnez %v3244_v60 }
 0x1ea   : > { %1642 = vmatprep.subr.msk.bf16.mxu1 %vm3331_vm3, %v1641_v27  ;;  %vm3332_vm1 = vmmov %vm3326_vm15  ;;  %vm873_vm15 = vcmp.lt.s32.totalorder %v2196_v17, 17  ;;  %vm930_vm3 = vcmp.lt.s32.totalorder %v2196_v17, 16  ;;  %v1866_v17 = vld [vmem:[%s3013_s2] sm:$0xff]   ;;  %v1288_v33 = vpop.permute.xlu0 %1287 }
 0x1eb   : > { %vm949_vm13 = vmand %vm3333_vm14, %vm3332_vm1  ;;  %vm3343_vm1 = vcmp.le.f32.partialorder %v2224_v9, 16.0  ;;  %v874_v53 = vsel %vm873_vm15, %v1754_v47, %v1755_v46  ;;  %v875_v60 = vsel %vm873_vm15, %v1750_v0, %v1754_v47  ;;  %v876_v24 = vsel %vm873_vm15, %v1749_v48, %v1750_v0 }
 0x1ec   : > { %vm3336_vm11 = vmpackc.low %vm3334_vm9, %vm3335_vm5  ;;  %v877_v40 = vsel %vm873_vm15, %v1755_v46, %v1749_v48  ;;  %v931_v9 = vsel %vm930_vm3, %v1764_v58, %v1765_v57  ;;  %v932_v3 = vsel %vm930_vm3, %v1760_v59, %v1764_v58  ;;  %v933_v10 = vsel %vm930_vm3, %v1759_v2, %v1760_v59 }
 0x1ed   : > { %1621 = vmatpush1.bf16.msk.msra.mxu0 %vm3336_vm11, %v1620_v31  ;;  %vm2914_vm0 = vmand %vm947_vm8, %vm3337_vm12  ;;  %v934_v29 = vsel %vm930_vm3, %v1765_v57, %v1759_v2  ;;  %vm3350_vm14 = vnez %v3323_v8  ;;  %v1647_v30 = vpack.c.bf16 %v931_v9, %v874_v53  ;;  %v1623_v41 = vpack.c.bf16 %v933_v10, %v876_v24 }
 0x1ee   : > { %vm3342_vm7 = vmpackc.low %vm3340_vm2, %vm3341_vm10  ;;  %v1626_v42 = vpack.c.bf16 %v934_v29, %v877_v40  ;;  %v1650_v34 = vpack.c.bf16 %v932_v3, %v875_v60  ;;  %vm3351_vm15 = vnez %v3287_v52  ;;  %vm3352_vm12 = vnez %v3278_v16  ;;  %v1293_v16 = vpop.permute.xlu1 %1292 }
 0x1ef   : > { %1645 = vmatpush1.bf16.msk.msra.mxu1 %vm3342_vm7, %v1644_v51  ;;  %vm2928_vm9 = vmand %vm2888_vm6, %vm3343_vm1  ;;  %vm3349_vm6 = vnez %v3315_v62 }
 0x1f0   : > { %vm3346_vm11 = vmmov %vm3343_vm1 }
 0x1f1   : > { %vm2934_vm5 = vmand %vm949_vm13, %vm3346_vm11 }
 0x1f2   : > { %vm1646_vm8 = vmpackc.low %vm3349_vm6, %vm2838_vm4 }
 0x1f3   : > { %vm1625_vm13 = vmpackc.low %vm2914_vm0, %vm3350_vm14  ;;  %1648 = vmatprep.subr.msk.bf16.mxu1 %vm1646_vm8, %v1647_v30  ;;  %vm1300_vm0 = vcmask 588800  }
 0x1f4   : > { %vm1649_vm4 = vmpackc.low %vm2934_vm5, %vm2928_vm9 }
 0x1f5   : > { %vm3353_vm2 = vmpackc.low %vm3351_vm15, %vm3352_vm12  ;;  %1651 = vmatpush1.bf16.msk.msra.mxu1 %vm1649_vm4, %v1650_v34 }
 0x1f6   : > { %1624 = vmatprep.subr.msk.bf16.mxu0 %vm3353_vm2, %v1623_v41 }
 0x1f7   : > { %1627 = vmatpush1.bf16.msk.msra.mxu0 %vm1625_vm13, %v1626_v42 }
 0x1f8   : > { %1590 = vmatmul.mubr.msk.bf16.vlgmr.msra.gmra.mxu1 %vm1300_vm0, %v1866_v17 }
 0x1fa   : > { %1588 = vmatmul.mubr.msk.bf16.vlgmr.msra.gmra.mxu0 %vm1300_vm0, %v1866_v17 }
 0x2b8   : > { %v1394_v50 = vpop.f32.mrf.mxu1 }
 0x2b9   : > { %v1395_v6 = vadd.f32 %v1394_v50, %v1288_v33 }
 0x2ba   : > { %v1351_v19 = vpop.f32.mrf.mxu0  ;;  %v1396_v36 = vpop.f32.mrf.mxu1 }
 0x2bb   : > { %v1352_v52 = vadd.f32 %v1351_v19, %v1288_v33  ;;  %1591 = vst [vmem:[%s2976_s7 + $0x10] sm:$0xff] %v1395_v6  ;;  %v1397_v35 = vadd.f32 %v1396_v36, %v1288_v33 }
 0x2bc   : > { %v1353_v7 = vpop.f32.mrf.mxu0  ;;  %v1398_v11 = vpop.f32.mrf.mxu1 }
 0x2bd   : > { %1403 = vst [vmem:[%s2976_s7] sm:$0xff] %v1352_v52  ;;  %v1354_v54 = vadd.f32 %v1353_v7, %v1288_v33  ;;  %1592 = vst [vmem:[%s2976_s7 + $0x18] sm:$0xff] %v1397_v35  ;;  %v1399_v38 = vadd.f32 %v1398_v11, %v1293_v16 }
 0x2be   : > { %v1355_v1 = vpop.f32.mrf.mxu0  ;;  %v1400_v45 = vpop.f32.mrf.mxu1 }
 0x2bf   : > { %1404 = vst [vmem:[%s2976_s7 + $0x8] sm:$0xff] %v1354_v54  ;;  %v1356_v4 = vadd.f32 %v1355_v1, %v1293_v16  ;;  %1593 = vst [vmem:[%s2976_s7 + $0x30] sm:$0xff] %v1399_v38  ;;  %v1401_v55 = vadd.f32 %v1400_v45, %v1293_v16  ;;  %1418 = sbr.rel (!%p1956_p5) target bundleno = 716 (0x2cc), region = 63 }
 0x2c0   : > { %v1357_v39 = vpop.f32.mrf.mxu0 }
 0x2c1   : > { %1405 = vst [vmem:[%s2976_s7 + $0x20] sm:$0xff] %v1356_v4  ;;  %v1358_v15 = vadd.f32 %v1357_v39, %v1293_v16  ;;  %1594 = vst [vmem:[%s2976_s7 + $0x38] sm:$0xff] %v1401_v55 }
 0x2c2   : > { %v1439_v5 = vld [vmem:[%s2976_s7 + $0x10] sm:$0xff] (%p1956_p5) }
 0x2c3   : > { %1406 = vst [vmem:[%s2976_s7 + $0x28] sm:$0xff] %v1358_v15  ;;  %1440 = vst [vmem:[%s1422_s9 + $0x10] sm:$0xff] (%p1956_p5), %v1439_v5 }
 0x2c4   : > { %v1435_v44 = vld [vmem:[%s2976_s7] sm:$0xff]  ;;  %v1441_v18 = vld [vmem:[%s2976_s7 + $0x18] sm:$0xff] }
 0x2c5   : > { %1436 = vst [vmem:[%s1422_s9] sm:$0xff] %v1435_v44  ;;  %1442 = vst [vmem:[%s1422_s9 + $0x18] sm:$0xff] %v1441_v18 }
 0x2c6   : > { %v1437_v56 = vld [vmem:[%s2976_s7 + $0x8] sm:$0xff]  ;;  %v1447_v43 = vld [vmem:[%s2976_s7 + $0x30] sm:$0xff] }
 0x2c7   : > { %1438 = vst [vmem:[%s1422_s9 + $0x8] sm:$0xff] %v1437_v56  ;;  %1448 = vst [vmem:[%s1422_s9 + $0x50] sm:$0xff] %v1447_v43 }
 0x2c8   : > { %v1443_v49 = vld [vmem:[%s2976_s7 + $0x20] sm:$0xff]  ;;  %v1449_v62 = vld [vmem:[%s2976_s7 + $0x38] sm:$0xff] }
 0x2c9   : > { %1444 = vst [vmem:[%s1422_s9 + $0x40] sm:$0xff] %v1443_v49  ;;  %1450 = vst [vmem:[%s1422_s9 + $0x58] sm:$0xff] %v1449_v62 }
 0x2ca   : > { %v1445_v61 = vld [vmem:[%s2976_s7 + $0x28] sm:$0xff] }
 0x2cb   : > { %1446 = vst [vmem:[%s1422_s9 + $0x48] sm:$0xff] %v1445_v61 }
 0x2cc PF: > { %p11_p10 = scmp.ge.s32.totalorder %s1943_s19, 4   ;;  %s3354_s15 = smov %s1885_s16 }
 0x2cd   : > { %s3355_s16 = smov %s1954_s22  ;;  %s3356_s17 = smov %s1943_s19 }
 0x2ce   :  { %13 = sbr.rel (!%p11_p10) target bundleno = 2 (0x2), region = 118 }

</bundles_post_ra>
